<compile_context>
chip_gen: v7x
topology: tpu7x:2x2x1
jax: 0.10.0
libtpu: 0.0.40
codegen_flags: <defaults>
</compile_context>

<pallas_src>
import functools

import jax
import jax.numpy as jnp
from jax import lax
from jax.experimental import pallas as pl
from jax.experimental.pallas import tpu as pltpu


def _round_up(v, m):
  return (v + m - 1) // m * m


# ---------------------------------------------------------------------------
# Kernel 1: per row tile -- F.normalize(x) and the wide augmented projection.
#   W_aug cols = [W_0 | .. | W_{nh-1} | W_h@a_src_h (nh) | W_h@a_dst_h (nh) | 0]
# ---------------------------------------------------------------------------
def _make_proj_kernel():
  def kernel(x_ref, w_ref, xn_ref, wh_ref):
    x = x_ref[...]                                           # (TQ, FP) f32
    ssq = jnp.sum(x * x, axis=1, keepdims=True)
    inv_norm = lax.rsqrt(jnp.maximum(ssq, 1e-24))            # == 1/max(||x||,1e-12)
    xn_ref[...] = (x * inv_norm).astype(xn_ref.dtype)        # normalized rows (bf16)
    wh_ref[...] = jnp.dot(x.astype(jnp.bfloat16), w_ref[...],
                          preferred_element_type=jnp.float32).astype(wh_ref.dtype)
  return kernel


# ---------------------------------------------------------------------------
# Kernel 2: layer-1 multi-head GAT attention strip + fused layer-2 projection.
# ---------------------------------------------------------------------------
def _make_attn1_kernel(*, tq, nheads, nhid, lrelu_alpha):
  hw = nheads * nhid

  def kernel(xnq_ref, xnt_ref, wh_ref, dstt_ref, wout_ref, who_ref):
    r0 = pl.multiple_of(pl.program_id(0) * tq, tq)

    # Graph strip: cosine sim of this tile's rows vs all rows, 0.8 threshold.
    # (D^-1/2 A D^-1/2 is dropped: adj is only consumed via `adj > 0`.)
    sim = jnp.dot(xnq_ref[...], xnt_ref[...],
                  preferred_element_type=jnp.float32)        # (TQ, NP) f32
    mask_bias = jnp.where(sim >= 0.8, 0.0, -9e15)            # shared by all heads

    wh_all = wh_ref[...]                                     # (NP, WC) bf16 values
    src_q = wh_ref[pl.ds(r0, tq), :][:, hw:hw + nheads].astype(jnp.float32)  # (TQ, nh)
    dst_t = dstt_ref[...]                                    # (nh, NP) f32 (pre-transposed)

    acc = jnp.zeros(who_ref.shape, jnp.float32)              # (TQ, OC) x_cat @ W_out_aug
    for h in range(nheads):                                  # static unroll (nheads small)
      e = src_q[:, h:h + 1] + dst_t[h:h + 1, :]              # (TQ, NP)
      e = jnp.where(e > 0, e, lrelu_alpha * e)               # LeakyReLU(0.2)
      logits = e + mask_bias
      m = jnp.max(logits, axis=1, keepdims=True)
      p = jnp.exp(logits - m)
      inv = pl.reciprocal(jnp.sum(p, axis=1, keepdims=True), approx=True)
      att = (p * inv).astype(jnp.bfloat16)                   # (TQ, NP)
      hh = jnp.dot(att, wh_all[:, h * nhid:(h + 1) * nhid],
                   preferred_element_type=jnp.float32)       # (TQ, nhid)
      hh = jnp.where(hh > 0, hh, jnp.exp(jnp.minimum(hh, 0.0)) - 1.0)   # ELU
      # Accumulate this head's slice of x_cat @ W_out_aug (no concat copy).
      acc = acc + jnp.dot(hh.astype(jnp.bfloat16),
                          wout_ref[h * nhid:(h + 1) * nhid, :],
                          preferred_element_type=jnp.float32)
    who_ref[...] = acc

  return kernel


# ---------------------------------------------------------------------------
# Kernel 3: layer-2 (output) GAT attention strip + tanh.
# ---------------------------------------------------------------------------
def _make_attn2_kernel(*, tq, code_len, lrelu_alpha):
  def kernel(xnq_ref, xnt_ref, who_ref, dstt_ref, o_ref):
    r0 = pl.multiple_of(pl.program_id(0) * tq, tq)
    sim = jnp.dot(xnq_ref[...], xnt_ref[...],
                  preferred_element_type=jnp.float32)        # (TQ, NP)
    mask_bias = jnp.where(sim >= 0.8, 0.0, -9e15)

    who_all = who_ref[...]                                   # (NP, OC) f32
    src_q = who_ref[pl.ds(r0, tq), :][:, code_len:code_len + 1]   # (TQ, 1)
    e = src_q + dstt_ref[...]                                # (TQ,1) + (1,NP)
    e = jnp.where(e > 0, e, lrelu_alpha * e)
    logits = e + mask_bias
    m = jnp.max(logits, axis=1, keepdims=True)
    p = jnp.exp(logits - m)
    inv = pl.reciprocal(jnp.sum(p, axis=1, keepdims=True), approx=True)
    att = (p * inv).astype(jnp.bfloat16)
    out = jnp.dot(att, who_all.astype(jnp.bfloat16),
                  preferred_element_type=jnp.float32)        # (TQ, OC) lane-dense
    o_ref[...] = jnp.tanh(out)                               # alpha == 1.0 -> skip mul
  return kernel


def gatnet_forward(x, params, *, lrelu_alpha: float = 0.2, row_tile: int = 128):
  """GATNet.forward (eval mode): x (N, txt_feat_len) -> code (N, code_len)."""
  N, f_in = x.shape
  w_heads = params["W_heads"]                                # (nh, F, H)
  a_src = params["a_src_heads"][:, 0, :]                     # (nh, H)
  a_dst = params["a_dst_heads"][:, 0, :]                     # (nh, H)
  w_out = params["W_out"]                                    # (nh*H, code_len)
  a_src_o = params["a_src_out"]                              # (1, code_len)
  a_dst_o = params["a_dst_out"]                              # (1, code_len)
  nheads, _, nhid = w_heads.shape
  code_len = w_out.shape[1]
  hw = nheads * nhid

  # --- lane/sublane friendly padded sizes ----------------------------------
  tq = max(8, _round_up(min(row_tile, max(N, 8)), 8))        # query-row tile
  np_rows = _round_up(max(N, tq), tq)                        # padded rows
  fp = _round_up(f_in, 128)                                  # padded feature dim
  wc = _round_up(hw + 2 * nheads, 128)                       # padded layer-1 aug cols
  oc = _round_up(code_len + 2, 128)                          # padded layer-2 aug cols
  n_tiles = np_rows // tq

  # Padded input (zero rows -> sim 0 < 0.8 -> fully masked; sliced off at the end).
  x_p = jnp.zeros((np_rows, fp), jnp.float32).at[:N, :f_in].set(x.astype(jnp.float32))

  # Augmented layer-1 weights: all heads + folded attention vectors, padded to 128.
  w_all = jnp.transpose(w_heads, (1, 0, 2)).reshape(f_in, hw)
  asrc_proj = jnp.einsum("hfo,ho->fh", w_heads, a_src)       # (F, nh) = W_h @ a_src_h
  adst_proj = jnp.einsum("hfo,ho->fh", w_heads, a_dst)       # (F, nh) = W_h @ a_dst_h
  w_aug = jnp.zeros((fp, wc), jnp.float32)
  w_aug = w_aug.at[:f_in, :hw].set(w_all)
  w_aug = w_aug.at[:f_in, hw:hw + nheads].set(asrc_proj)
  w_aug = w_aug.at[:f_in, hw + nheads:hw + 2 * nheads].set(adst_proj)
  w_aug = w_aug.astype(jnp.bfloat16)

  # Augmented layer-2 weights: [W_out | W_out@a_src | W_out@a_dst | 0 pad].
  w_out_aug = jnp.zeros((hw, oc), jnp.float32)
  w_out_aug = w_out_aug.at[:, :code_len].set(w_out)
  w_out_aug = w_out_aug.at[:, code_len:code_len + 1].set(w_out @ a_src_o.T)
  w_out_aug = w_out_aug.at[:, code_len + 1:code_len + 2].set(w_out @ a_dst_o.T)
  w_out_aug = w_out_aug.astype(jnp.bfloat16)

  cparams = pltpu.CompilerParams(
      dimension_semantics=("parallel",),            # megacore row sharding on v7x
      vmem_limit_bytes=64 * 1024 * 1024,            # raise scoped limit (v7x ceiling)
  )

  # --- 1) projection + normalization (row-tiled) ----------------------------
  xn, wh_aug = pl.pallas_call(
      _make_proj_kernel(),
      out_shape=(jax.ShapeDtypeStruct((np_rows, fp), jnp.bfloat16),
                 jax.ShapeDtypeStruct((np_rows, wc), jnp.bfloat16)),
      grid=(n_tiles,),
      in_specs=[pl.BlockSpec((tq, fp), lambda i: (i, 0)),
                pl.BlockSpec((fp, wc), lambda i: (0, 0))],
      out_specs=(pl.BlockSpec((tq, fp), lambda i: (i, 0)),
                 pl.BlockSpec((tq, wc), lambda i: (i, 0))),
      compiler_params=cparams,
  )(x_p, w_aug)

  # Layout plumbing done once in the wrapper (not per tile / per head):
  xn_t = xn.T                                                           # (FP, NP) keys
  wh_dst_t = wh_aug[:, hw + nheads:hw + 2 * nheads].astype(jnp.float32).T   # (nh, NP)

  # --- 2) layer-1 attention strips + fused layer-2 projection ---------------
  who_aug = pl.pallas_call(
      _make_attn1_kernel(tq=tq, nheads=nheads, nhid=nhid, lrelu_alpha=lrelu_alpha),
      out_shape=jax.ShapeDtypeStruct((np_rows, oc), jnp.float32),
      grid=(n_tiles,),
      in_specs=[pl.BlockSpec((tq, fp), lambda i: (i, 0)),           # xn query rows (pipelined)
                pl.BlockSpec((fp, np_rows), lambda i: (0, 0)),      # xn^T keys (resident)
                pl.BlockSpec((np_rows, wc), lambda i: (0, 0)),      # Wh_aug all rows (resident)
                pl.BlockSpec((nheads, np_rows), lambda i: (0, 0)),  # dst logits^T (resident)
                pl.BlockSpec((hw, oc), lambda i: (0, 0))],          # W_out_aug (resident)
      out_specs=pl.BlockSpec((tq, oc), lambda i: (i, 0)),
      compiler_params=cparams,
  )(xn, xn_t, wh_aug, wh_dst_t, w_out_aug)

  who_dst_t = who_aug[:, code_len + 1:code_len + 2].T                # (1, NP)

  # --- 3) layer-2 attention strips + tanh ------------------------------------
  code_p = pl.pallas_call(
      _make_attn2_kernel(tq=tq, code_len=code_len, lrelu_alpha=lrelu_alpha),
      out_shape=jax.ShapeDtypeStruct((np_rows, oc), jnp.float32),
      grid=(n_tiles,),
      in_specs=[pl.BlockSpec((tq, fp), lambda i: (i, 0)),           # xn query rows
                pl.BlockSpec((fp, np_rows), lambda i: (0, 0)),      # xn^T keys
                pl.BlockSpec((np_rows, oc), lambda i: (0, 0)),      # Wh_out_aug all rows
                pl.BlockSpec((1, np_rows), lambda i: (0, 0))],      # dst logit^T
      out_specs=pl.BlockSpec((tq, oc), lambda i: (i, 0)),
      compiler_params=cparams,
  )(xn, xn_t, who_aug, who_dst_t)

  return code_p[:N, :code_len]


def init_params(key, txt_feat_len, nhid, code_len, nheads):
  ks = jax.random.split(key, 6)
  return {
      "W_heads": 0.1 * jax.random.normal(
          ks[0], (nheads, txt_feat_len, nhid), jnp.float32),
      "a_src_heads": 0.1 * jax.random.normal(
          ks[1], (nheads, 1, nhid), jnp.float32),
      "a_dst_heads": 0.1 * jax.random.normal(
          ks[2], (nheads, 1, nhid), jnp.float32),
      "W_out": 0.1 * jax.random.normal(
          ks[3], (nhid * nheads, code_len), jnp.float32),
      "a_src_out": 0.1 * jax.random.normal(ks[4], (1, code_len), jnp.float32),
      "a_dst_out": 0.1 * jax.random.normal(ks[5], (1, code_len), jnp.float32),
  }


def gatnet_reference(x, params, lrelu_alpha=0.2):
  """Pure-JAX f32 reference mirroring the PyTorch module (eval mode)."""
  sq = jnp.sum(x * x, axis=1, keepdims=True)
  xn = x / jnp.maximum(jnp.sqrt(sq), 1e-12)
  sim = xn @ xn.T
  a_bin = jnp.where(sim >= 0.8, 1.0, 0.0)
  rowsum = jnp.sum(a_bin, axis=1)
  r = jnp.where(rowsum > 0, rowsum ** -0.5, 0.0)
  adj = a_bin * r[:, None] * r[None, :]

  def gat(xin, w, a_s, a_d, concat):
    wh = xin @ w
    e = wh @ a_s.T + (wh @ a_d.T).T
    e = jnp.where(e > 0, e, lrelu_alpha * e)
    att = jax.nn.softmax(jnp.where(adj > 0, e, -9e15), axis=1)
    h = att @ wh
    if concat:
      h = jnp.where(h > 0, h, jnp.exp(jnp.minimum(h, 0.0)) - 1.0)
    return h

  nheads = params["W_heads"].shape[0]
  heads = [gat(x, params["W_heads"][i], params["a_src_heads"][i],
               params["a_dst_heads"][i], True) for i in range(nheads)]
  x_cat = jnp.concatenate(heads, axis=1)
  out = gat(x_cat, params["W_out"], params["a_src_out"],
            params["a_dst_out"], False)
  return jnp.tanh(out)   # alpha == 1.0


if __name__ == "__main__":
  N = 40
  TXT_FEAT_LEN = 32
  NHID = 32
  NHEADS = 4
  CODE_LEN = 16
  ROW_TILE = 16          # N=40 pads to 48 rows -> 3 row tiles (exercises tiling + padding)

  key = jax.random.PRNGKey(0)
  kc, kn, kp = jax.random.split(key, 3)

  # Clustered text features so the 0.8 cosine threshold yields a non-trivial graph
  # (within-cluster edges + self-loops) with a margin far larger than bf16 rounding.
  n_clusters = 5
  centers = jax.random.normal(kc, (n_clusters, TXT_FEAT_LEN), jnp.float32)
  assign = jnp.arange(N) % n_clusters
  x = centers[assign] + 0.05 * jax.random.normal(kn, (N, TXT_FEAT_LEN), jnp.float32)

  params = init_params(kp, TXT_FEAT_LEN, NHID, CODE_LEN, NHEADS)

  fwd = jax.jit(functools.partial(gatnet_forward, row_tile=ROW_TILE))
  code = fwd(x, params)
  jax.block_until_ready(code)

  assert code.shape == (N, CODE_LEN)
  assert code.dtype == jnp.float32
  assert bool(jnp.all(jnp.isfinite(code)))
  assert bool(jnp.all(jnp.abs(code) <= 1.0))   # tanh output range

  code_ref = gatnet_reference(x, params)
  max_err = float(jnp.max(jnp.abs(code - code_ref)))
  assert max_err < 0.1, f"kernel deviates from f32 reference: max|diff|={max_err}"

  print("KERNEL_OK")
</pallas_src>

<mosaic_0001>
module attributes {stable_mosaic.version = 11 : i64} {
  func.func @kernel(%arg0: i32, %arg1: memref<16x128xf32, #tpu.memory_space<vmem>>, %arg2: memref<128x256xbf16, #tpu.memory_space<vmem>>, %arg3: memref<16x128xbf16, #tpu.memory_space<vmem>>, %arg4: memref<16x256xbf16, #tpu.memory_space<vmem>>) attributes {dimension_semantics = [#tpu.dimension_semantics<parallel>], iteration_bounds = array<i64: 3>, scalar_prefetch = 0 : i64, scratch_operands = 0 : i64, tpu.core_type = #tpu.core_type<tc>, window_params = [{transform_indices = @transform_0, window_bounds = array<i64: 16, 128>}, {pipeline_mode = #tpu.pipeline_mode<synchronous>, transform_indices = @transform_1, window_bounds = array<i64: 128, 256>}, {transform_indices = @transform_2, window_bounds = array<i64: 16, 128>}, {transform_indices = @transform_3, window_bounds = array<i64: 16, 256>}]} {
    %c0 = arith.constant 0 : index
    %c0_0 = arith.constant 0 : index
    %0 = vector.load %arg1[%c0, %c0_0] : memref<16x128xf32, #tpu.memory_space<vmem>>, vector<16x128xf32>
    %1 = arith.mulf %0, %0 : vector<16x128xf32>
    %cst = arith.constant dense<0.000000e+00> : vector<16xf32>
    %2 = vector.multi_reduction <add>, %1, %cst [1] : vector<16x128xf32> to vector<16xf32>
    %3 = vector.shape_cast %2 : vector<16xf32> to vector<16x1xf32>
    %cst_1 = arith.constant 1.000000e-24 : f32
    %4 = vector.broadcast %cst_1 : f32 to vector<16x1xf32>
    %5 = arith.maximumf %3, %4 : vector<16x1xf32>
    %6 = math.rsqrt %5 : vector<16x1xf32>
    %7 = vector.broadcast %6 : vector<16x1xf32> to vector<16x128xf32>
    %8 = arith.mulf %0, %7 : vector<16x128xf32>
    %9 = arith.truncf %8 : vector<16x128xf32> to vector<16x128xbf16>
    %c0_2 = arith.constant 0 : index
    %c0_3 = arith.constant 0 : index
    %10 = vector.load %arg3[%c0_2, %c0_3] : memref<16x128xbf16, #tpu.memory_space<vmem>>, vector<16x128xbf16>
    tpu.vector_store %arg3[%c0_2, %c0_3], %9 {strides = array<i32>} : memref<16x128xbf16, #tpu.memory_space<vmem>>, vector<16x128xbf16>,
    %11 = arith.truncf %0 : vector<16x128xf32> to vector<16x128xbf16>
    %c0_4 = arith.constant 0 : index
    %c0_5 = arith.constant 0 : index
    %12 = vector.load %arg2[%c0_4, %c0_5] : memref<128x256xbf16, #tpu.memory_space<vmem>>, vector<128x256xbf16>
    %cst_6 = arith.constant dense<0.000000e+00> : vector<16x256xf32>
    %13 = tpu.matmul %11, %12, %cst_6 {dimension_numbers = #tpu.dot_dimension_numbers<[1], [0], [0], [1], [0, 0, 1, 1], [], []>} : vector<16x128xbf16>, vector<128x256xbf16>, vector<16x256xf32> -> vector<16x256xf32>
    %14 = arith.truncf %13 : vector<16x256xf32> to vector<16x256xbf16>
    %c0_7 = arith.constant 0 : index
    %c0_8 = arith.constant 0 : index
    %15 = vector.load %arg4[%c0_7, %c0_8] : memref<16x256xbf16, #tpu.memory_space<vmem>>, vector<16x256xbf16>
    tpu.vector_store %arg4[%c0_7, %c0_8], %14 {strides = array<i32>} : memref<16x256xbf16, #tpu.memory_space<vmem>>, vector<16x256xbf16>,
    return
  }
  func.func @transform_0(%arg0: i32) -> (i32, i32) {
    %c0_i32 = arith.constant 0 : i32
    %c0_i32_0 = arith.constant 0 : i32
    return %arg0, %c0_i32 : i32, i32
  }
  func.func @transform_1(%arg0: i32) -> (i32, i32) {
    %c0_i32 = arith.constant 0 : i32
    %c0_i32_0 = arith.constant 0 : i32
    %c0_i32_1 = arith.constant 0 : i32
    return %c0_i32, %c0_i32_0 : i32, i32
  }
  func.func @transform_2(%arg0: i32) -> (i32, i32) {
    %c0_i32 = arith.constant 0 : i32
    %c0_i32_0 = arith.constant 0 : i32
    return %arg0, %c0_i32 : i32, i32
  }
  func.func @transform_3(%arg0: i32) -> (i32, i32) {
    %c0_i32 = arith.constant 0 : i32
    %c0_i32_0 = arith.constant 0 : i32
    return %arg0, %c0_i32 : i32, i32
  }
}

module attributes {stable_mosaic.version = 11 : i64} {
  func.func @kernel(%arg0: i32, %arg1: memref<16x128xbf16, #tpu.memory_space<vmem>>, %arg2: memref<128x48xbf16, #tpu.memory_space<vmem>>, %arg3: memref<48x256xbf16, #tpu.memory_space<vmem>>, %arg4: memref<4x48xf32, #tpu.memory_space<vmem>>, %arg5: memref<128x128xbf16, #tpu.memory_space<vmem>>, %arg6: memref<16x128xf32, #tpu.memory_space<vmem>>) attributes {dimension_semantics = [#tpu.dimension_semantics<parallel>], iteration_bounds = array<i64: 3>, scalar_prefetch = 0 : i64, scratch_operands = 0 : i64, tpu.core_type = #tpu.core_type<tc>, window_params = [{transform_indices = @transform_0, window_bounds = array<i64: 16, 128>}, {pipeline_mode = #tpu.pipeline_mode<synchronous>, transform_indices = @transform_1, window_bounds = array<i64: 128, 48>}, {pipeline_mode = #tpu.pipeline_mode<synchronous>, transform_indices = @transform_2, window_bounds = array<i64: 48, 256>}, {pipeline_mode = #tpu.pipeline_mode<synchronous>, transform_indices = @transform_3, window_bounds = array<i64: 4, 48>}, {pipeline_mode = #tpu.pipeline_mode<synchronous>, transform_indices = @transform_4, window_bounds = array<i64: 128, 128>}, {transform_indices = @transform_5, window_bounds = array<i64: 16, 128>}]} {
    %c16_i32 = arith.constant 16 : i32
    %0 = arith.muli %arg0, %c16_i32 : i32
    %1 = tpu.assume_multiple %0, 16 : i32
    %c0 = arith.constant 0 : index
    %c0_0 = arith.constant 0 : index
    %2 = vector.load %arg1[%c0, %c0_0] : memref<16x128xbf16, #tpu.memory_space<vmem>>, vector<16x128xbf16>
    %c0_1 = arith.constant 0 : index
    %c0_2 = arith.constant 0 : index
    %3 = vector.load %arg2[%c0_1, %c0_2] : memref<128x48xbf16, #tpu.memory_space<vmem>>, vector<128x48xbf16>
    %cst = arith.constant dense<0.000000e+00> : vector<16x48xf32>
    %4 = tpu.matmul %2, %3, %cst {dimension_numbers = #tpu.dot_dimension_numbers<[1], [0], [0], [1], [0, 0, 1, 1], [], []>} : vector<16x128xbf16>, vector<128x48xbf16>, vector<16x48xf32> -> vector<16x48xf32>
    %cst_3 = arith.constant 8.000000e-01 : f32
    %5 = vector.broadcast %cst_3 : f32 to vector<16x48xf32>
    %6 = arith.cmpf oge, %4, %5 : vector<16x48xf32>
    %cst_4 = arith.constant 0.000000e+00 : f32
    %cst_5 = arith.constant -9.000000e+15 : f32
    %7 = vector.broadcast %cst_4 : f32 to vector<16x48xf32>
    %8 = vector.broadcast %cst_5 : f32 to vector<16x48xf32>
    %9 = arith.select %6, %7, %8 : vector<16x48xi1>, vector<16x48xf32>
    %c0_6 = arith.constant 0 : index
    %c0_7 = arith.constant 0 : index
    %10 = vector.load %arg3[%c0_6, %c0_7] : memref<48x256xbf16, #tpu.memory_space<vmem>>, vector<48x256xbf16>
    %11 = arith.index_cast %1 : i32 to index
    %c0_8 = arith.constant 0 : index
    %12 = vector.load %arg3[%11, %c0_8] : memref<48x256xbf16, #tpu.memory_space<vmem>>, vector<16x256xbf16>
    %13 = vector.extract_strided_slice %12 {offsets = [0, 128], sizes = [16, 4], strides = [1, 1]} : vector<16x256xbf16> to vector<16x4xbf16>
    %14 = arith.extf %13 : vector<16x4xbf16> to vector<16x4xf32>
    %c0_9 = arith.constant 0 : index
    %c0_10 = arith.constant 0 : index
    %15 = vector.load %arg4[%c0_9, %c0_10] : memref<4x48xf32, #tpu.memory_space<vmem>>, vector<4x48xf32>
    %cst_11 = arith.constant 0.000000e+00 : f32
    %16 = vector.broadcast %cst_11 : f32 to vector<16x128xf32>
    %17 = vector.extract_strided_slice %14 {offsets = [0, 0], sizes = [16, 1], strides = [1, 1]} : vector<16x4xf32> to vector<16x1xf32>
    %18 = vector.extract_strided_slice %15 {offsets = [0, 0], sizes = [1, 48], strides = [1, 1]} : vector<4x48xf32> to vector<1x48xf32>
    %19 = vector.broadcast %17 : vector<16x1xf32> to vector<16x48xf32>
    %20 = vector.broadcast %18 : vector<1x48xf32> to vector<16x48xf32>
    %21 = arith.addf %19, %20 : vector<16x48xf32>
    %cst_12 = arith.constant 0.000000e+00 : f32
    %22 = vector.broadcast %cst_12 : f32 to vector<16x48xf32>
    %23 = arith.cmpf ogt, %21, %22 : vector<16x48xf32>
    %cst_13 = arith.constant 2.000000e-01 : f32
    %24 = vector.broadcast %cst_13 : f32 to vector<16x48xf32>
    %25 = arith.mulf %24, %21 : vector<16x48xf32>
    %26 = arith.select %23, %21, %25 : vector<16x48xi1>, vector<16x48xf32>
    %27 = arith.addf %26, %9 : vector<16x48xf32>
    %cst_14 = arith.constant dense<0xFF800000> : vector<16xf32>
    %28 = vector.multi_reduction <maximumf>, %27, %cst_14 [1] : vector<16x48xf32> to vector<16xf32>
    %29 = vector.shape_cast %28 : vector<16xf32> to vector<16x1xf32>
    %30 = vector.broadcast %29 : vector<16x1xf32> to vector<16x48xf32>
    %31 = arith.subf %27, %30 : vector<16x48xf32>
    %32 = math.exp %31 : vector<16x48xf32>
    %cst_15 = arith.constant dense<0.000000e+00> : vector<16xf32>
    %33 = vector.multi_reduction <add>, %32, %cst_15 [1] : vector<16x48xf32> to vector<16xf32>
    %34 = vector.shape_cast %33 : vector<16xf32> to vector<16x1xf32>
    %35 = tpu.reciprocal %34 {approx = true} : vector<16x1xf32> -> vector<16x1xf32>
    %36 = vector.broadcast %35 : vector<16x1xf32> to vector<16x48xf32>
    %37 = arith.mulf %32, %36 : vector<16x48xf32>
    %38 = arith.truncf %37 : vector<16x48xf32> to vector<16x48xbf16>
    %39 = vector.extract_strided_slice %10 {offsets = [0, 0], sizes = [48, 32], strides = [1, 1]} : vector<48x256xbf16> to vector<48x32xbf16>
    %cst_16 = arith.constant dense<0.000000e+00> : vector<16x32xf32>
    %40 = tpu.matmul %38, %39, %cst_16 {dimension_numbers = #tpu.dot_dimension_numbers<[1], [0], [0], [1], [0, 0, 1, 1], [], []>} : vector<16x48xbf16>, vector<48x32xbf16>, vector<16x32xf32> -> vector<16x32xf32>
    %cst_17 = arith.constant 0.000000e+00 : f32
    %41 = vector.broadcast %cst_17 : f32 to vector<16x32xf32>
    %42 = arith.cmpf ogt, %40, %41 : vector<16x32xf32>
    %cst_18 = arith.constant 0.000000e+00 : f32
    %43 = vector.broadcast %cst_18 : f32 to vector<16x32xf32>
    %44 = arith.minimumf %40, %43 : vector<16x32xf32>
    %45 = math.exp %44 : vector<16x32xf32>
    %cst_19 = arith.constant 1.000000e+00 : f32
    %46 = vector.broadcast %cst_19 : f32 to vector<16x32xf32>
    %47 = arith.subf %45, %46 : vector<16x32xf32>
    %48 = arith.select %42, %40, %47 : vector<16x32xi1>, vector<16x32xf32>
    %49 = arith.truncf %48 : vector<16x32xf32> to vector<16x32xbf16>
    %c0_20 = arith.constant 0 : index
    %c0_21 = arith.constant 0 : index
    %50 = vector.load %arg5[%c0_20, %c0_21] : memref<128x128xbf16, #tpu.memory_space<vmem>>, vector<32x128xbf16>
    %cst_22 = arith.constant dense<0.000000e+00> : vector<16x128xf32>
    %51 = tpu.matmul %49, %50, %cst_22 {dimension_numbers = #tpu.dot_dimension_numbers<[1], [0], [0], [1], [0, 0, 1, 1], [], []>} : vector<16x32xbf16>, vector<32x128xbf16>, vector<16x128xf32> -> vector<16x128xf32>
    %52 = arith.addf %16, %51 : vector<16x128xf32>
    %53 = vector.extract_strided_slice %14 {offsets = [0, 1], sizes = [16, 1], strides = [1, 1]} : vector<16x4xf32> to vector<16x1xf32>
    %54 = vector.extract_strided_slice %15 {offsets = [1, 0], sizes = [1, 48], strides = [1, 1]} : vector<4x48xf32> to vector<1x48xf32>
    %55 = vector.broadcast %53 : vector<16x1xf32> to vector<16x48xf32>
    %56 = vector.broadcast %54 : vector<1x48xf32> to vector<16x48xf32>
    %57 = arith.addf %55, %56 : vector<16x48xf32>
    %cst_23 = arith.constant 0.000000e+00 : f32
    %58 = vector.broadcast %cst_23 : f32 to vector<16x48xf32>
    %59 = arith.cmpf ogt, %57, %58 : vector<16x48xf32>
    %cst_24 = arith.constant 2.000000e-01 : f32
    %60 = vector.broadcast %cst_24 : f32 to vector<16x48xf32>
    %61 = arith.mulf %60, %57 : vector<16x48xf32>
    %62 = arith.select %59, %57, %61 : vector<16x48xi1>, vector<16x48xf32>
    %63 = arith.addf %62, %9 : vector<16x48xf32>
    %cst_25 = arith.constant dense<0xFF800000> : vector<16xf32>
    %64 = vector.multi_reduction <maximumf>, %63, %cst_25 [1] : vector<16x48xf32> to vector<16xf32>
    %65 = vector.shape_cast %64 : vector<16xf32> to vector<16x1xf32>
    %66 = vector.broadcast %65 : vector<16x1xf32> to vector<16x48xf32>
    %67 = arith.subf %63, %66 : vector<16x48xf32>
    %68 = math.exp %67 : vector<16x48xf32>
    %cst_26 = arith.constant dense<0.000000e+00> : vector<16xf32>
    %69 = vector.multi_reduction <add>, %68, %cst_26 [1] : vector<16x48xf32> to vector<16xf32>
    %70 = vector.shape_cast %69 : vector<16xf32> to vector<16x1xf32>
    %71 = tpu.reciprocal %70 {approx = true} : vector<16x1xf32> -> vector<16x1xf32>
    %72 = vector.broadcast %71 : vector<16x1xf32> to vector<16x48xf32>
    %73 = arith.mulf %68, %72 : vector<16x48xf32>
    %74 = arith.truncf %73 : vector<16x48xf32> to vector<16x48xbf16>
    %75 = vector.extract_strided_slice %10 {offsets = [0, 32], sizes = [48, 32], strides = [1, 1]} : vector<48x256xbf16> to vector<48x32xbf16>
    %cst_27 = arith.constant dense<0.000000e+00> : vector<16x32xf32>
    %76 = tpu.matmul %74, %75, %cst_27 {dimension_numbers = #tpu.dot_dimension_numbers<[1], [0], [0], [1], [0, 0, 1, 1], [], []>} : vector<16x48xbf16>, vector<48x32xbf16>, vector<16x32xf32> -> vector<16x32xf32>
    %cst_28 = arith.constant 0.000000e+00 : f32
    %77 = vector.broadcast %cst_28 : f32 to vector<16x32xf32>
    %78 = arith.cmpf ogt, %76, %77 : vector<16x32xf32>
    %cst_29 = arith.constant 0.000000e+00 : f32
    %79 = vector.broadcast %cst_29 : f32 to vector<16x32xf32>
    %80 = arith.minimumf %76, %79 : vector<16x32xf32>
    %81 = math.exp %80 : vector<16x32xf32>
    %cst_30 = arith.constant 1.000000e+00 : f32
    %82 = vector.broadcast %cst_30 : f32 to vector<16x32xf32>
    %83 = arith.subf %81, %82 : vector<16x32xf32>
    %84 = arith.select %78, %76, %83 : vector<16x32xi1>, vector<16x32xf32>
    %85 = arith.truncf %84 : vector<16x32xf32> to vector<16x32xbf16>
    %c32 = arith.constant 32 : index
    %c0_31 = arith.constant 0 : index
    %86 = vector.load %arg5[%c32, %c0_31] : memref<128x128xbf16, #tpu.memory_space<vmem>>, vector<32x128xbf16>
    %cst_32 = arith.constant dense<0.000000e+00> : vector<16x128xf32>
    %87 = tpu.matmul %85, %86, %cst_32 {dimension_numbers = #tpu.dot_dimension_numbers<[1], [0], [0], [1], [0, 0, 1, 1], [], []>} : vector<16x32xbf16>, vector<32x128xbf16>, vector<16x128xf32> -> vector<16x128xf32>
    %88 = arith.addf %52, %87 : vector<16x128xf32>
    %89 = vector.extract_strided_slice %14 {offsets = [0, 2], sizes = [16, 1], strides = [1, 1]} : vector<16x4xf32> to vector<16x1xf32>
    %90 = vector.extract_strided_slice %15 {offsets = [2, 0], sizes = [1, 48], strides = [1, 1]} : vector<4x48xf32> to vector<1x48xf32>
    %91 = vector.broadcast %89 : vector<16x1xf32> to vector<16x48xf32>
    %92 = vector.broadcast %90 : vector<1x48xf32> to vector<16x48xf32>
    %93 = arith.addf %91, %92 : vector<16x48xf32>
    %cst_33 = arith.constant 0.000000e+00 : f32
    %94 = vector.broadcast %cst_33 : f32 to vector<16x48xf32>
    %95 = arith.cmpf ogt, %93, %94 : vector<16x48xf32>
    %cst_34 = arith.constant 2.000000e-01 : f32
    %96 = vector.broadcast %cst_34 : f32 to vector<16x48xf32>
    %97 = arith.mulf %96, %93 : vector<16x48xf32>
    %98 = arith.select %95, %93, %97 : vector<16x48xi1>, vector<16x48xf32>
    %99 = arith.addf %98, %9 : vector<16x48xf32>
    %cst_35 = arith.constant dense<0xFF800000> : vector<16xf32>
    %100 = vector.multi_reduction <maximumf>, %99, %cst_35 [1] : vector<16x48xf32> to vector<16xf32>
    %101 = vector.shape_cast %100 : vector<16xf32> to vector<16x1xf32>
    %102 = vector.broadcast %101 : vector<16x1xf32> to vector<16x48xf32>
    %103 = arith.subf %99, %102 : vector<16x48xf32>
    %104 = math.exp %103 : vector<16x48xf32>
    %cst_36 = arith.constant dense<0.000000e+00> : vector<16xf32>
    %105 = vector.multi_reduction <add>, %104, %cst_36 [1] : vector<16x48xf32> to vector<16xf32>
    %106 = vector.shape_cast %105 : vector<16xf32> to vector<16x1xf32>
    %107 = tpu.reciprocal %106 {approx = true} : vector<16x1xf32> -> vector<16x1xf32>
    %108 = vector.broadcast %107 : vector<16x1xf32> to vector<16x48xf32>
    %109 = arith.mulf %104, %108 : vector<16x48xf32>
    %110 = arith.truncf %109 : vector<16x48xf32> to vector<16x48xbf16>
    %111 = vector.extract_strided_slice %10 {offsets = [0, 64], sizes = [48, 32], strides = [1, 1]} : vector<48x256xbf16> to vector<48x32xbf16>
    %cst_37 = arith.constant dense<0.000000e+00> : vector<16x32xf32>
    %112 = tpu.matmul %110, %111, %cst_37 {dimension_numbers = #tpu.dot_dimension_numbers<[1], [0], [0], [1], [0, 0, 1, 1], [], []>} : vector<16x48xbf16>, vector<48x32xbf16>, vector<16x32xf32> -> vector<16x32xf32>
    %cst_38 = arith.constant 0.000000e+00 : f32
    %113 = vector.broadcast %cst_38 : f32 to vector<16x32xf32>
    %114 = arith.cmpf ogt, %112, %113 : vector<16x32xf32>
    %cst_39 = arith.constant 0.000000e+00 : f32
    %115 = vector.broadcast %cst_39 : f32 to vector<16x32xf32>
    %116 = arith.minimumf %112, %115 : vector<16x32xf32>
    %117 = math.exp %116 : vector<16x32xf32>
    %cst_40 = arith.constant 1.000000e+00 : f32
    %118 = vector.broadcast %cst_40 : f32 to vector<16x32xf32>
    %119 = arith.subf %117, %118 : vector<16x32xf32>
    %120 = arith.select %114, %112, %119 : vector<16x32xi1>, vector<16x32xf32>
    %121 = arith.truncf %120 : vector<16x32xf32> to vector<16x32xbf16>
    %c64 = arith.constant 64 : index
    %c0_41 = arith.constant 0 : index
    %122 = vector.load %arg5[%c64, %c0_41] : memref<128x128xbf16, #tpu.memory_space<vmem>>, vector<32x128xbf16>
    %cst_42 = arith.constant dense<0.000000e+00> : vector<16x128xf32>
    %123 = tpu.matmul %121, %122, %cst_42 {dimension_numbers = #tpu.dot_dimension_numbers<[1], [0], [0], [1], [0, 0, 1, 1], [], []>} : vector<16x32xbf16>, vector<32x128xbf16>, vector<16x128xf32> -> vector<16x128xf32>
    %124 = arith.addf %88, %123 : vector<16x128xf32>
    %125 = vector.extract_strided_slice %14 {offsets = [0, 3], sizes = [16, 1], strides = [1, 1]} : vector<16x4xf32> to vector<16x1xf32>
    %126 = vector.extract_strided_slice %15 {offsets = [3, 0], sizes = [1, 48], strides = [1, 1]} : vector<4x48xf32> to vector<1x48xf32>
    %127 = vector.broadcast %125 : vector<16x1xf32> to vector<16x48xf32>
    %128 = vector.broadcast %126 : vector<1x48xf32> to vector<16x48xf32>
    %129 = arith.addf %127, %128 : vector<16x48xf32>
    %cst_43 = arith.constant 0.000000e+00 : f32
    %130 = vector.broadcast %cst_43 : f32 to vector<16x48xf32>
    %131 = arith.cmpf ogt, %129, %130 : vector<16x48xf32>
    %cst_44 = arith.constant 2.000000e-01 : f32
    %132 = vector.broadcast %cst_44 : f32 to vector<16x48xf32>
    %133 = arith.mulf %132, %129 : vector<16x48xf32>
    %134 = arith.select %131, %129, %133 : vector<16x48xi1>, vector<16x48xf32>
    %135 = arith.addf %134, %9 : vector<16x48xf32>
    %cst_45 = arith.constant dense<0xFF800000> : vector<16xf32>
    %136 = vector.multi_reduction <maximumf>, %135, %cst_45 [1] : vector<16x48xf32> to vector<16xf32>
    %137 = vector.shape_cast %136 : vector<16xf32> to vector<16x1xf32>
    %138 = vector.broadcast %137 : vector<16x1xf32> to vector<16x48xf32>
    %139 = arith.subf %135, %138 : vector<16x48xf32>
    %140 = math.exp %139 : vector<16x48xf32>
    %cst_46 = arith.constant dense<0.000000e+00> : vector<16xf32>
    %141 = vector.multi_reduction <add>, %140, %cst_46 [1] : vector<16x48xf32> to vector<16xf32>
    %142 = vector.shape_cast %141 : vector<16xf32> to vector<16x1xf32>
    %143 = tpu.reciprocal %142 {approx = true} : vector<16x1xf32> -> vector<16x1xf32>
    %144 = vector.broadcast %143 : vector<16x1xf32> to vector<16x48xf32>
    %145 = arith.mulf %140, %144 : vector<16x48xf32>
    %146 = arith.truncf %145 : vector<16x48xf32> to vector<16x48xbf16>
    %147 = vector.extract_strided_slice %10 {offsets = [0, 96], sizes = [48, 32], strides = [1, 1]} : vector<48x256xbf16> to vector<48x32xbf16>
    %cst_47 = arith.constant dense<0.000000e+00> : vector<16x32xf32>
    %148 = tpu.matmul %146, %147, %cst_47 {dimension_numbers = #tpu.dot_dimension_numbers<[1], [0], [0], [1], [0, 0, 1, 1], [], []>} : vector<16x48xbf16>, vector<48x32xbf16>, vector<16x32xf32> -> vector<16x32xf32>
    %cst_48 = arith.constant 0.000000e+00 : f32
    %149 = vector.broadcast %cst_48 : f32 to vector<16x32xf32>
    %150 = arith.cmpf ogt, %148, %149 : vector<16x32xf32>
    %cst_49 = arith.constant 0.000000e+00 : f32
    %151 = vector.broadcast %cst_49 : f32 to vector<16x32xf32>
    %152 = arith.minimumf %148, %151 : vector<16x32xf32>
    %153 = math.exp %152 : vector<16x32xf32>
    %cst_50 = arith.constant 1.000000e+00 : f32
    %154 = vector.broadcast %cst_50 : f32 to vector<16x32xf32>
    %155 = arith.subf %153, %154 : vector<16x32xf32>
    %156 = arith.select %150, %148, %155 : vector<16x32xi1>, vector<16x32xf32>
    %157 = arith.truncf %156 : vector<16x32xf32> to vector<16x32xbf16>
    %c96 = arith.constant 96 : index
    %c0_51 = arith.constant 0 : index
    %158 = vector.load %arg5[%c96, %c0_51] : memref<128x128xbf16, #tpu.memory_space<vmem>>, vector<32x128xbf16>
    %cst_52 = arith.constant dense<0.000000e+00> : vector<16x128xf32>
    %159 = tpu.matmul %157, %158, %cst_52 {dimension_numbers = #tpu.dot_dimension_numbers<[1], [0], [0], [1], [0, 0, 1, 1], [], []>} : vector<16x32xbf16>, vector<32x128xbf16>, vector<16x128xf32> -> vector<16x128xf32>
    %160 = arith.addf %124, %159 : vector<16x128xf32>
    %c0_53 = arith.constant 0 : index
    %c0_54 = arith.constant 0 : index
    %161 = vector.load %arg6[%c0_53, %c0_54] : memref<16x128xf32, #tpu.memory_space<vmem>>, vector<16x128xf32>
    tpu.vector_store %arg6[%c0_53, %c0_54], %160 {strides = array<i32>} : memref<16x128xf32, #tpu.memory_space<vmem>>, vector<16x128xf32>,
    return
  }
  func.func @transform_0(%arg0: i32) -> (i32, i32) {
    %c0_i32 = arith.constant 0 : i32
    %c0_i32_0 = arith.constant 0 : i32
    return %arg0, %c0_i32 : i32, i32
  }
  func.func @transform_1(%arg0: i32) -> (i32, i32) {
    %c0_i32 = arith.constant 0 : i32
    %c0_i32_0 = arith.constant 0 : i32
    %c0_i32_1 = arith.constant 0 : i32
    return %c0_i32, %c0_i32_0 : i32, i32
  }
  func.func @transform_2(%arg0: i32) -> (i32, i32) {
    %c0_i32 = arith.constant 0 : i32
    %c0_i32_0 = arith.constant 0 : i32
    %c0_i32_1 = arith.constant 0 : i32
    return %c0_i32, %c0_i32_0 : i32, i32
  }
  func.func @transform_3(%arg0: i32) -> (i32, i32) {
    %c0_i32 = arith.constant 0 : i32
    %c0_i32_0 = arith.constant 0 : i32
    %c0_i32_1 = arith.constant 0 : i32
    return %c0_i32, %c0_i32_0 : i32, i32
  }
  func.func @transform_4(%arg0: i32) -> (i32, i32) {
    %c0_i32 = arith.constant 0 : i32
    %c0_i32_0 = arith.constant 0 : i32
    %c0_i32_1 = arith.constant 0 : i32
    return %c0_i32, %c0_i32_0 : i32, i32
  }
  func.func @transform_5(%arg0: i32) -> (i32, i32) {
    %c0_i32 = arith.constant 0 : i32
    %c0_i32_0 = arith.constant 0 : i32
    return %arg0, %c0_i32 : i32, i32
  }
}

module attributes {stable_mosaic.version = 11 : i64} {
  func.func @kernel(%arg0: i32, %arg1: memref<16x128xbf16, #tpu.memory_space<vmem>>, %arg2: memref<128x48xbf16, #tpu.memory_space<vmem>>, %arg3: memref<48x128xf32, #tpu.memory_space<vmem>>, %arg4: memref<1x48xf32, #tpu.memory_space<vmem>>, %arg5: memref<16x128xf32, #tpu.memory_space<vmem>>) attributes {dimension_semantics = [#tpu.dimension_semantics<parallel>], iteration_bounds = array<i64: 3>, scalar_prefetch = 0 : i64, scratch_operands = 0 : i64, tpu.core_type = #tpu.core_type<tc>, window_params = [{transform_indices = @transform_0, window_bounds = array<i64: 16, 128>}, {pipeline_mode = #tpu.pipeline_mode<synchronous>, transform_indices = @transform_1, window_bounds = array<i64: 128, 48>}, {pipeline_mode = #tpu.pipeline_mode<synchronous>, transform_indices = @transform_2, window_bounds = array<i64: 48, 128>}, {pipeline_mode = #tpu.pipeline_mode<synchronous>, transform_indices = @transform_3, window_bounds = array<i64: 1, 48>}, {transform_indices = @transform_4, window_bounds = array<i64: 16, 128>}]} {
    %c16_i32 = arith.constant 16 : i32
    %0 = arith.muli %arg0, %c16_i32 : i32
    %1 = tpu.assume_multiple %0, 16 : i32
    %c0 = arith.constant 0 : index
    %c0_0 = arith.constant 0 : index
    %2 = vector.load %arg1[%c0, %c0_0] : memref<16x128xbf16, #tpu.memory_space<vmem>>, vector<16x128xbf16>
    %c0_1 = arith.constant 0 : index
    %c0_2 = arith.constant 0 : index
    %3 = vector.load %arg2[%c0_1, %c0_2] : memref<128x48xbf16, #tpu.memory_space<vmem>>, vector<128x48xbf16>
    %cst = arith.constant dense<0.000000e+00> : vector<16x48xf32>
    %4 = tpu.matmul %2, %3, %cst {dimension_numbers = #tpu.dot_dimension_numbers<[1], [0], [0], [1], [0, 0, 1, 1], [], []>} : vector<16x128xbf16>, vector<128x48xbf16>, vector<16x48xf32> -> vector<16x48xf32>
    %cst_3 = arith.constant 8.000000e-01 : f32
    %5 = vector.broadcast %cst_3 : f32 to vector<16x48xf32>
    %6 = arith.cmpf oge, %4, %5 : vector<16x48xf32>
    %cst_4 = arith.constant 0.000000e+00 : f32
    %cst_5 = arith.constant -9.000000e+15 : f32
    %7 = vector.broadcast %cst_4 : f32 to vector<16x48xf32>
    %8 = vector.broadcast %cst_5 : f32 to vector<16x48xf32>
    %9 = arith.select %6, %7, %8 : vector<16x48xi1>, vector<16x48xf32>
    %c0_6 = arith.constant 0 : index
    %c0_7 = arith.constant 0 : index
    %10 = vector.load %arg3[%c0_6, %c0_7] : memref<48x128xf32, #tpu.memory_space<vmem>>, vector<48x128xf32>
    %11 = arith.index_cast %1 : i32 to index
    %c0_8 = arith.constant 0 : index
    %12 = vector.load %arg3[%11, %c0_8] : memref<48x128xf32, #tpu.memory_space<vmem>>, vector<16x128xf32>
    %13 = vector.extract_strided_slice %12 {offsets = [0, 16], sizes = [16, 1], strides = [1, 1]} : vector<16x128xf32> to vector<16x1xf32>
    %c0_9 = arith.constant 0 : index
    %c0_10 = arith.constant 0 : index
    %14 = vector.load %arg4[%c0_9, %c0_10] : memref<1x48xf32, #tpu.memory_space<vmem>>, vector<1x48xf32>
    %15 = vector.broadcast %13 : vector<16x1xf32> to vector<16x48xf32>
    %16 = vector.broadcast %14 : vector<1x48xf32> to vector<16x48xf32>
    %17 = arith.addf %15, %16 : vector<16x48xf32>
    %cst_11 = arith.constant 0.000000e+00 : f32
    %18 = vector.broadcast %cst_11 : f32 to vector<16x48xf32>
    %19 = arith.cmpf ogt, %17, %18 : vector<16x48xf32>
    %cst_12 = arith.constant 2.000000e-01 : f32
    %20 = vector.broadcast %cst_12 : f32 to vector<16x48xf32>
    %21 = arith.mulf %20, %17 : vector<16x48xf32>
    %22 = arith.select %19, %17, %21 : vector<16x48xi1>, vector<16x48xf32>
    %23 = arith.addf %22, %9 : vector<16x48xf32>
    %cst_13 = arith.constant dense<0xFF800000> : vector<16xf32>
    %24 = vector.multi_reduction <maximumf>, %23, %cst_13 [1] : vector<16x48xf32> to vector<16xf32>
    %25 = vector.shape_cast %24 : vector<16xf32> to vector<16x1xf32>
    %26 = vector.broadcast %25 : vector<16x1xf32> to vector<16x48xf32>
    %27 = arith.subf %23, %26 : vector<16x48xf32>
    %28 = math.exp %27 : vector<16x48xf32>
    %cst_14 = arith.constant dense<0.000000e+00> : vector<16xf32>
    %29 = vector.multi_reduction <add>, %28, %cst_14 [1] : vector<16x48xf32> to vector<16xf32>
    %30 = vector.shape_cast %29 : vector<16xf32> to vector<16x1xf32>
    %31 = tpu.reciprocal %30 {approx = true} : vector<16x1xf32> -> vector<16x1xf32>
    %32 = vector.broadcast %31 : vector<16x1xf32> to vector<16x48xf32>
    %33 = arith.mulf %28, %32 : vector<16x48xf32>
    %34 = arith.truncf %33 : vector<16x48xf32> to vector<16x48xbf16>
    %35 = arith.truncf %10 : vector<48x128xf32> to vector<48x128xbf16>
    %cst_15 = arith.constant dense<0.000000e+00> : vector<16x128xf32>
    %36 = tpu.matmul %34, %35, %cst_15 {dimension_numbers = #tpu.dot_dimension_numbers<[1], [0], [0], [1], [0, 0, 1, 1], [], []>} : vector<16x48xbf16>, vector<48x128xbf16>, vector<16x128xf32> -> vector<16x128xf32>
    %37 = math.tanh %36 : vector<16x128xf32>
    %c0_16 = arith.constant 0 : index
    %c0_17 = arith.constant 0 : index
    %38 = vector.load %arg5[%c0_16, %c0_17] : memref<16x128xf32, #tpu.memory_space<vmem>>, vector<16x128xf32>
    tpu.vector_store %arg5[%c0_16, %c0_17], %37 {strides = array<i32>} : memref<16x128xf32, #tpu.memory_space<vmem>>, vector<16x128xf32>,
    return
  }
  func.func @transform_0(%arg0: i32) -> (i32, i32) {
    %c0_i32 = arith.constant 0 : i32
    %c0_i32_0 = arith.constant 0 : i32
    return %arg0, %c0_i32 : i32, i32
  }
  func.func @transform_1(%arg0: i32) -> (i32, i32) {
    %c0_i32 = arith.constant 0 : i32
    %c0_i32_0 = arith.constant 0 : i32
    %c0_i32_1 = arith.constant 0 : i32
    return %c0_i32, %c0_i32_0 : i32, i32
  }
  func.func @transform_2(%arg0: i32) -> (i32, i32) {
    %c0_i32 = arith.constant 0 : i32
    %c0_i32_0 = arith.constant 0 : i32
    %c0_i32_1 = arith.constant 0 : i32
    return %c0_i32, %c0_i32_0 : i32, i32
  }
  func.func @transform_3(%arg0: i32) -> (i32, i32) {
    %c0_i32 = arith.constant 0 : i32
    %c0_i32_0 = arith.constant 0 : i32
    %c0_i32_1 = arith.constant 0 : i32
    return %c0_i32, %c0_i32_0 : i32, i32
  }
  func.func @transform_4(%arg0: i32) -> (i32, i32) {
    %c0_i32 = arith.constant 0 : i32
    %c0_i32_0 = arith.constant 0 : i32
    return %arg0, %c0_i32 : i32, i32
  }
}

</mosaic_0001>

<bundles_post_ra>
// kernel: gatnet_forward.3
= control target key start
LH: loop header
LB: loop body
LE: loop exit
PB: predicated region body
PF: predicated region fallthrough
CT: control target
= control target key end

     0   :  { %9 = vsyncpa [#allocation3], 0  ;;  %s1127_s0 = inlined_call_operand.hbm [shape: f32[48,128], index: 0, kind: input, shape index: {}]   ;;  %s1128_s1 = inlined_call_operand.hbm [shape: bf16[128,256], index: 1, kind: input, shape index: {}]   ;;  %s1129_s2 = inlined_call_operand.hbm [shape: bf16[48,128], index: 2, kind: output, shape index: {0}]   ;;  %s1130_s3 = inlined_call_operand.hbm [shape: bf16[48,256], index: 3, kind: output, shape index: {1}]  }
   0x1   :  { %11 = vsyncpa [#allocation3 + $0x1], 0 }
   0x2   :  { %12 = vsyncpa [#allocation6], 0 }
   0x3   :  { %13 = vsyncpa [#allocation4], 0 }
   0x4   :  { %15 = vsyncpa [#allocation4 + $0x1], 0 }
   0x5   :  { %16 = vsyncpa [#allocation9], 0 }
   0x6   :  { %18 = vsyncpa [#allocation9 + $0x1], 0  ;;  %s892_s12 = smov 0   ;;  %s894_s13 = smov 0  }
   0x7   :  { %s896_s14 = smov 0   ;;  %s898_s15 = smov 0  }
   0x8 LB: > { %s913_s16 = sadd.s32 4294967295, %s859_s15   ;;  %s548_s17 = sadd.s32 4294967294, %s859_s15   ;;  %s859_s15 = sphi %s898_s15, %s1149_s15   ;;  %s855_s14 = sphi %s896_s14, %s1148_s14   ;;  %s851_s13 = sphi %s894_s13, %s1147_s13   ;;  %s847_s12 = sphi %s892_s12, %s1146_s12  }
   0x9   : > { %p44_p0 = scmp.ne.s32.totalorder %s851_s13, %s847_s12  ;;  %p1131_p1 = scmp.eq.s32.totalorder %s913_s16, 0 }
   0xa   : > { %p95_p3 = scmp.eq.s32.totalorder %s548_s17, 2  ;;  %p549_p5 = scmp.ge.s32.totalorder %s859_s15, 1 }
   0xb   : > { %p922_p4 = por %p1131_p1, %p44_p0  ;;  %p128_p7 = scmp.lt.s32.totalorder %s859_s15, 4 }
   0xc   : > { %p927_p6 = por %p95_p3, %p44_p0  ;;  %s861_s21 = smov [#allocation5]  }
   0xd   : > { %s1134_s18 = scalar_select %p922_p4, 1, 0 }
   0xe   : > { %s1135_s19 = scalar_select %p927_p6, 1, 0 }
   0xf   : > { %p932_p8 = pnand %p549_p5, %p128_p7  ;;  %s140_s22 = sshll.u32 %s861_s21, 4  ;;  %s141_s22 = int_to_ptr.vmem [resolvable:$true] %s140_s22 }
  0x10   : > { %s945_s24 = sadd.s32 1, %s859_s15   ;;  %s31_s25 = sadd.s32 1, %s855_s14 }
  0x11   : > { %s1136_s20 = scalar_select %p932_p8, 1, 0 }
  0x12   : > { %p612_p9 = pneg %p932_p8  ;;  %s28_s26 = ssub.s32 %s859_s15, %s945_s24 }
  0x13   : > { %s699_s29 = scalar_lea.hbm %s1128_s1, 2048 }
  0x14   : > { %p940_p10 = pnand %p612_p9, %p1131_p1  ;;  %p700_p11 = scmp.ne.s32.totalorder %s1128_s1, %s699_s29 }
  0x15   : > { %p706_p3 = scmp.lt.u32.totalorder %s699_s29, %s1128_s1 }
  0x16   : > { %p701_p12 = pneg %p940_p10 }
  0x18   : > { %p702_p13 = pnand %p701_p12, %p700_p11 }
  0x1a   : > { %p703_p0 = pneg %p702_p13 }
  0x1c   : > { %p708_p5 = pnand %p706_p3, %p703_p0 }
  0x1e   : > { %711 = shalt.err (!%p708_p5)
}
  0x1f   : > { %s712_s7 = scalar_lea.vmem %s141_s22, 2048  ;;  %p720_p2 = scmp.lt.s32.totalorder %s141_s22, %s141_s22 }
  0x20   : > { %p713_p7 = scmp.ne.s32.totalorder %s141_s22, %s712_s7  ;;  %p721_p6 = scmp.lt.s32.totalorder %s712_s7, %s712_s7 }
  0x22   : > { %p715_p9 = pnand %p713_p7, %p701_p12  ;;  %p722_p4 = por %p721_p6, %p720_p2 }
  0x24   : > { %p716_p1 = pneg %p715_p9 }
  0x26   : > { %p723_p8 = pnand %p722_p4, %p716_p1 }
  0x28   : > { %726 = shalt.err (!%p723_p8)
}
  0x29   : > { %s862_s8 = smov 128   ;;  %s863_s9 = smov 8  }
  0x2a   : > { %615 = dma.hbm_to_vmem [thread:$0]  (!%p940_p10), %s1128_s1, 2048, %s141_s22, [#allocation6], %s862_s8, %s862_s8, %s863_s9  }
  0x2b   : > { %p29_p1 = scmp.eq.s32.totalorder %s28_s26, 0  ;;  %p38_p2 = scmp.ne.s32.totalorder %s855_s14, %s851_s13 }
  0x2c   : > { %p39_p4 = scmp.eq.s32.totalorder %s859_s15, 0  ;;  %p628_p6 = scmp.lt.s32.totalorder %s859_s15, 3 }
  0x2d   : > { %s974_s17 = scalar_select %p29_p1, %s855_s14, %s31_s25  }
  0x2e   : > { %p40_p8 = por %p39_p4, %p38_p2  ;;  %p1138_p11 = scmp.eq.s32.totalorder %s913_s16, 2 }
  0x2f   : > { %s154_s23 = sand.u32 1, %s855_s14   ;;  %s589_s27 = sshll.u32 %s859_s15, 8 }
  0x30   : > { %p978_p12 = por %p1138_p11, %p38_p2  ;;  %s552_s28 = sshll.u32 %s154_s23, 4 }
  0x31   : > { %s987_s4 = scalar_lea.hbm %s1127_s0, %s589_s27  ;;  %s158_s22 = scalar_lea.vmem [#allocation2], %s552_s28 }
  0x32   : > { %s165_s25 = sshll.u32 %s158_s22, 4  ;;  %p989_p10 = pnand %p628_p6, %p40_p8  ;;  %s993_s25 = int_to_ptr.vmem [resolvable:$true] %s165_s25 }
  0x33   : > { %s995_s5 = scalar_lea.sflag [#allocation3], %s154_s23  ;;  %s727_s6 = scalar_lea.hbm %s987_s4, 256 }
  0x34   : > { %p728_p13 = scmp.ne.s32.totalorder %s987_s4, %s727_s6  ;;  %p729_p0 = pneg %p989_p10 }
  0x35   : > { %s732_s11 = scalar_lea.hbm %s1127_s0, 768  ;;  %p733_p7 = scmp.lt.u32.totalorder %s987_s4, %s1127_s0 }
  0x36   : > { %p730_p3 = pnand %p729_p0, %p728_p13  ;;  %p734_p9 = scmp.lt.u32.totalorder %s732_s11, %s727_s6 }
  0x37   : > { %p736_p2 = scmp.lt.u32.totalorder %s727_s6, %s987_s4 }
  0x38   : > { %p731_p5 = pneg %p730_p3  ;;  %p735_p1 = por %p734_p9, %p733_p7 }
  0x3a   : > { %p737_p4 = por %p736_p2, %p735_p1 }
  0x3c   : > { %p738_p6 = pnand %p737_p4, %p731_p5 }
  0x3e   : > { %741 = shalt.err (!%p738_p6)
}
  0x3f   : > { %s742_s23 = scalar_lea.vmem %s993_s25, 256  ;;  %s864_s29 = smov [#allocation2]  }
  0x40   : > { %p743_p8 = scmp.ne.s32.totalorder %s993_s25, %s742_s23  ;;  %s747_s30 = sshll.u32 %s864_s29, 4  ;;  %s748_s30 = int_to_ptr.vmem [resolvable:$false] %s747_s30 }
  0x41   : > { %s749_s22 = scalar_lea.vmem %s748_s30, 512  ;;  %p750_p3 = scmp.lt.s32.totalorder %s993_s25, %s748_s30 }
  0x42   : > { %p745_p11 = pnand %p743_p8, %p729_p0  ;;  %p751_p7 = scmp.lt.s32.totalorder %s749_s22, %s742_s23 }
  0x44   : > { %p746_p13 = pneg %p745_p11  ;;  %p752_p9 = por %p751_p7, %p750_p3 }
  0x46   : > { %p753_p1 = pnand %p752_p9, %p746_p13 }
  0x48   : > { %756 = shalt.err (!%p753_p1)
}
  0x49   : > { %619 = dma.hbm_to_vmem [thread:$0]  (!%p989_p10), %s987_s4, 256, %s993_s25, %s995_s5, %s862_s8, %s862_s8, %s863_s9  }
  0x4a   : > { %p1141_p0 = scmp.ne.s32.totalorder %s1136_s20, 0 }
  0x4b   : > { %s1029_s6 = sand.u32 (!%p1141_p0), 1, %s851_s13   ;;  %p1142_p5 = scmp.ne.s32.totalorder (!%p1141_p0), %s1134_s18, 0 }
  0x4c   : > { %177 = sbr.rel (%p1141_p0) target bundleno = 352 (0x160), region = 28  ;;  %s556_s7 = sshll.u32 (!%p1141_p0), %s1029_s6, 4 }
  0x4d   : > { %s180_s10 = scalar_lea.sflag (!%p1141_p0), [#allocation3], %s1029_s6  ;;  %s183_s26 = scalar_lea.vmem (!%p1141_p0), [#allocation2], %s556_s7 }
  0x53   : > { %830 = dma.done.wait (%p1142_p5), %s180_s10, 256  }
  0x54   : > { %832 = vsyncadd (%p1142_p5), %s180_s10, 4294967040  ;;  %p1143_p10 = scmp.eq.s32.totalorder %s913_s16, 0 }
  0x56   : > { %834 = dma.done.wait (%p1143_p10), [#allocation6], 2048   ;;  %p1144_p2 = pmov %p1143_p10 }
  0x57   : > { %v865_v0 = vmov 0   ;;  %v671_v1 = vld [vmem:[#allocation5 + $0x4] ss:$8 sps:$4 sm:$0xff]   ;;  %v673_v2 = vld [vmem:[#allocation5] ss:$8 sps:$4 sm:$0xff]   ;;  %s558_s18 = sshll.u32 %s1029_s6, 3 }
  0x58   : > { %836 = vsyncadd (%p1144_p2), [#allocation6], 4294965248  ;;  %372 = vmatprep.mubr.bf16.mxu0 %v865_v0  ;;  %340 = vmatprep.subr.bf16.mxu0 %v671_v1  ;;  %v674_v3 = vld [vmem:[#allocation5 + $0x14] ss:$8 sps:$4 sm:$0xff]   ;;  %v676_v4 = vld [vmem:[#allocation5 + $0x10] ss:$8 sps:$4 sm:$0xff]  }
  0x59   : > { %341 = vmatpush1.bf16.msra.mxu0 %v673_v2  ;;  %v677_v5 = vld [vmem:[#allocation5 + $0x24] ss:$8 sps:$4 sm:$0xff]   ;;  %v679_v6 = vld [vmem:[#allocation5 + $0x20] ss:$8 sps:$4 sm:$0xff]   ;;  %v680_v7 = vld [vmem:[#allocation5 + $0x34] ss:$8 sps:$4 sm:$0xff]  }
  0x5a   : > { %342 = vmatprep.subr.bf16.mxu0 %v674_v3  ;;  %v219_v8 = vld [vmem:[%s183_s26] sm:$0xff]  ;;  %v220_v12 = vld [vmem:[%s183_s26 + $0x8] sm:$0xff]  ;;  %s594_s20 = sshll.u32 %s913_s16, 7  ;;  %s207_s8 = scalar_lea.vmem [#allocation7], %s558_s18 }
  0x5b   : > { %v682_v9 = vld [vmem:[#allocation5 + $0x30] ss:$8 sps:$4 sm:$0xff]   ;;  %v221_v10 = vmul.f32 %v219_v8, %v219_v8  ;;  %v683_v11 = vld [vmem:[#allocation5 + $0x44] ss:$8 sps:$4 sm:$0xff]   ;;  %v222_v13 = vmul.f32 %v220_v12, %v220_v12  ;;  %v685_v14 = vld [vmem:[#allocation5 + $0x40] ss:$8 sps:$4 sm:$0xff]   ;;  %v243_v21 = vpack.c.bf16 %v220_v12, %v219_v8  ;;  %s1048_s5 = scalar_lea.hbm %s1129_s2, %s594_s20 }
  0x5c   : > { %v686_v15 = vld [vmem:[#allocation5 + $0x54] ss:$8 sps:$4 sm:$0xff]   ;;  %v688_v16 = vld [vmem:[#allocation5 + $0x50] ss:$8 sps:$4 sm:$0xff]   ;;  %v689_v17 = vld [vmem:[#allocation5 + $0x64] ss:$8 sps:$4 sm:$0xff]  }
  0x5d   : > { %343 = vmatpush1.bf16.msra.mxu0 %v676_v4  ;;  %223 = vadd.xlane.f32.xlu0 %v221_v10  ;;  %v691_v18 = vld [vmem:[#allocation5 + $0x60] ss:$8 sps:$4 sm:$0xff]   ;;  %v692_v19 = vld [vmem:[#allocation5 + $0x74] ss:$8 sps:$4 sm:$0xff]   ;;  %v694_v20 = vld [vmem:[#allocation5 + $0x70] ss:$8 sps:$4 sm:$0xff]  }
  0x5e   : > { %344 = vmatprep.subr.bf16.mxu0 %v677_v5  ;;  %s416_s9 = sshll.u32 %s207_s8, 4  ;;  %s398_s11 = scalar_lea.sflag [#allocation4], %s1029_s6  ;;  %s1050_s9 = int_to_ptr.vmem [resolvable:$true] %s416_s9 }
  0x5f   : > { %s757_s27 = scalar_lea.vmem %s1050_s9, 128  ;;  %s866_s28 = smov [#allocation7]  }
  0x60   : > { %p758_p4 = scmp.ne.s32.totalorder %s1050_s9, %s757_s27  ;;  %s761_s23 = sshll.u32 %s866_s28, 4  ;;  %s762_s23 = int_to_ptr.vmem [resolvable:$false] %s761_s23 }
  0x61   : > { %345 = vmatpush1.bf16.msra.mxu0 %v679_v6  ;;  %225 = vadd.xlane.f32.xlu0 %v222_v13  ;;  %s763_s29 = scalar_lea.vmem %s762_s23, 256  ;;  %p764_p11 = scmp.lt.s32.totalorder %s1050_s9, %s762_s23 }
  0x62   : > { %346 = vmatprep.subr.bf16.mxu0 %v680_v7  ;;  %p759_p6 = pnand %p758_p4, %p978_p12  ;;  %p765_p13 = scmp.lt.s32.totalorder %s763_s29, %s757_s27 }
  0x64   : > { %p760_p8 = pneg %p759_p6  ;;  %p766_p3 = por %p765_p13, %p764_p11 }
  0x65   : > { %347 = vmatpush1.bf16.msra.mxu0 %v682_v9 }
  0x66   : > { %348 = vmatprep.subr.bf16.mxu0 %v683_v11  ;;  %p767_p7 = pnand %p766_p3, %p760_p8 }
  0x69   : > { %349 = vmatpush1.bf16.msra.mxu0 %v685_v14 }
  0x6a   : > { %350 = vmatprep.subr.bf16.mxu0 %v686_v15 }
  0x6d   : > { %351 = vmatpush1.bf16.msra.mxu0 %v688_v16 }
  0x6e   : > { %352 = vmatprep.subr.bf16.mxu0 %v689_v17 }
  0x71   : > { %353 = vmatpush1.bf16.msra.mxu0 %v691_v18 }
  0x72   : > { %354 = vmatprep.subr.bf16.mxu0 %v692_v19 }
  0x75   : > { %355 = vmatpush1.bf16.msra.mxu0 %v694_v20 }
  0x78   : > { %373 = vmatmul.mubr.bf16.vlgmr.msra.gmra.mrb[0].mxu0 %v243_v21 }
  0xea   : > { %v224_v22 = vpop.xlane.xlu0 %223 }
  0xeb   : > { %v227_v23 = vmax.f32 %v224_v22, 1e-24 }
  0xed   : > { %695 = vrsqrt.f32 %v227_v23 }
  0xee   : > { %v226_v24 = vpop.xlane.xlu0 %225 }
  0xef   : > { %v228_v25 = vmax.f32 %v226_v24, 1e-24 }
  0xf1   : > { %697 = vrsqrt.f32 %v228_v25 }
  0xf7   : > { %v696_v26 = vpop.eup %695 }
  0xf8   : > { %v231_v27 = vmul.f32 %v696_v26, %v219_v8 }
  0xfb   : > { %v698_v28 = vpop.eup %697 }
  0xfc   : > { %v232_v29 = vmul.f32 %v698_v28, %v220_v12 }
  0xfe   : > { %v600_v30 = vpack.c.bf16 %v232_v29, %v231_v27 }
 0x100   : > { %601 = vst [vmem:[%s207_s8] sm:$0xff] %v600_v30  }
 0x101   : > { %770 = shalt.err (!%p767_p7)
}
 0x102   : > { %s771_s30 = scalar_lea.hbm %s1048_s5, 128  ;;  %s775_s26 = scalar_lea.hbm %s1129_s2, 384 }
 0x103   : > { %p772_p9 = scmp.ne.s32.totalorder %s1048_s5, %s771_s30  ;;  %p776_p5 = scmp.lt.u32.totalorder %s1048_s5, %s1129_s2 }
 0x104   : > { %p777_p10 = scmp.lt.u32.totalorder %s775_s26, %s771_s30  ;;  %p779_p4 = scmp.lt.u32.totalorder %s771_s30, %s1048_s5 }
 0x105   : > { %p773_p1 = pnand %p772_p9, %p978_p12 }
 0x106   : > { %p778_p2 = por %p777_p10, %p776_p5 }
 0x107   : > { %p774_p0 = pneg %p773_p1 }
 0x108   : > { %p780_p6 = por %p779_p4, %p778_p2 }
 0x10a   : > { %p781_p8 = pnand %p780_p6, %p774_p0 }
 0x10c   : > { %784 = shalt.err (!%p781_p8)
}
 0x10d   : > { %s867_s8 = smov 64   ;;  %s868_s4 = smov 4  }
 0x10e   : > { %608 = dma.vmem_to_hbm [thread:$0]  (%p978_p12), %s1050_s9, 128, %s1048_s5, %s398_s11, %s867_s8, %s867_s8, %s868_s4  }
 0x10f   : > { %s214_s25 = scalar_lea.vmem [#allocation8], %s556_s7  ;;  %s596_s28 = sshll.u32 %s913_s16, 8 }
 0x110   : > { %s433_s27 = sshll.u32 %s214_s25, 4  ;;  %s1084_s30 = scalar_lea.hbm %s1130_s3, %s596_s28  ;;  %s1079_s27 = int_to_ptr.vmem [resolvable:$true] %s433_s27 }
 0x111   : > { %s403_s7 = scalar_lea.sflag [#allocation9], %s1029_s6  ;;  %s785_s9 = scalar_lea.vmem %s1079_s27, 256 }
 0x112   : > { %p786_p11 = scmp.ne.s32.totalorder %s1079_s27, %s785_s9  ;;  %s869_s16 = smov [#allocation8]  }
 0x113   : > { %s789_s5 = sshll.u32 %s869_s16, 4  ;;  %s790_s5 = int_to_ptr.vmem [resolvable:$false] %s789_s5 }
 0x114   : > { %p787_p13 = pnand %p786_p11, %p978_p12  ;;  %s791_s11 = scalar_lea.vmem %s790_s5, 512 }
 0x115   : > { %p792_p7 = scmp.lt.s32.totalorder %s1079_s27, %s790_s5  ;;  %p793_p9 = scmp.lt.s32.totalorder %s791_s11, %s785_s9 }
 0x116   : > { %p788_p3 = pneg %p787_p13 }
 0x117   : > { %p794_p1 = por %p793_p9, %p792_p7 }
 0x119   : > { %p795_p0 = pnand %p794_p1, %p788_p3 }
 0x14b   : > { %v374_v31 = vpop.f32.mrb[0].mxu0 }
 0x14c   : > { %v376_v32 = vpop.f32.mrb[1].mxu0 }
 0x14d   : > { %v592_v33 = vpack.c.bf16 %v376_v32, %v374_v31  ;;  %v378_v34 = vpop.f32.mrb[2].mxu0 }
 0x14e   : > { %v380_v35 = vpop.f32.mrb[3].mxu0 }
 0x14f   : > { %395 = vst [vmem:[%s214_s25] sm:$0xff] %v592_v33  ;;  %v593_v36 = vpack.c.bf16 %v380_v35, %v378_v34 }
 0x151   : > { %396 = vst [vmem:[%s214_s25 + $0x8] sm:$0xff] %v593_v36 }
 0x152   : > { %798 = shalt.err (!%p795_p0)
}
 0x153   : > { %s799_s22 = scalar_lea.hbm %s1084_s30, 256  ;;  %s803_s18 = scalar_lea.hbm %s1130_s3, 768 }
 0x154   : > { %p800_p5 = scmp.ne.s32.totalorder %s1084_s30, %s799_s22  ;;  %p804_p4 = scmp.lt.u32.totalorder %s1084_s30, %s1130_s3 }
 0x155   : > { %p805_p6 = scmp.lt.u32.totalorder %s803_s18, %s799_s22  ;;  %p807_p11 = scmp.lt.u32.totalorder %s799_s22, %s1084_s30 }
 0x156   : > { %p801_p10 = pnand %p800_p5, %p978_p12 }
 0x157   : > { %p806_p8 = por %p805_p6, %p804_p4 }
 0x158   : > { %p802_p2 = pneg %p801_p10 }
 0x159   : > { %p808_p13 = por %p807_p11, %p806_p8 }
 0x15b   : > { %p809_p3 = pnand %p808_p13, %p802_p2 }
 0x15d   : > { %812 = shalt.err (!%p809_p3)
}
 0x15e   : > { %s870_s4 = smov 128   ;;  %s871_s25 = smov 8  }
 0x15f   : > { %609 = dma.vmem_to_hbm [thread:$0]  (%p978_p12), %s1079_s27, 256, %s1084_s30, %s403_s7, %s870_s4, %s870_s4, %s871_s25  }
 0x160 PF: > { %p630_p7 = scmp.ge.s32.totalorder %s859_s15, 2  ;;  %s448_s28 = sand.u32 1, %s847_s12  }
 0x161   : > { %p1145_p9 = scmp.ne.s32.totalorder %s1135_s19, 0  ;;  %s449_s23 = scalar_lea.sflag [#allocation4], %s448_s28 }
 0x163   : > { %p621_p1 = pnand %p630_p7, %p1145_p9 }
 0x165   : > { %838 = dma.done.wait (!%p621_p1), %s449_s23, 128  }
 0x166   : > { %840 = vsyncadd (!%p621_p1), %s449_s23, 4294967168  ;;  %s458_s29 = scalar_lea.sflag [#allocation9], %s448_s28 }
 0x167   : > { %842 = dma.done.wait (!%p621_p1), %s458_s29, 256  }
 0x168   : > { %844 = vsyncadd (!%p621_p1), %s458_s29, 4294967040  ;;  %p21_p12 = scmp.ge.s32.totalorder %s945_s24, 5   ;;  %s1146_s12 = smov %s851_s13 }
 0x169   : > { %s1147_s13 = smov %s855_s14  ;;  %s1148_s14 = smov %s974_s17 }
 0x16a   : > { %s1149_s15 = smov %s945_s24  ;;  %23 = sbr.rel (!%p21_p12) target bundleno = 8 (0x8), region = 94 }
 0x171   :  { %463 = vsyncpa [#allocation3], 1 }
 0x172   :  { %465 = vsyncpa [#allocation3 + $0x1], 1 }
 0x173   :  { %466 = vsyncpa [#allocation6], 1 }
 0x174   :  { %467 = vsyncpa [#allocation4], 1 }
 0x175   :  { %469 = vsyncpa [#allocation4 + $0x1], 1 }
 0x176   :  { %470 = vsyncpa [#allocation9], 1 }
 0x177   :  { %472 = vsyncpa [#allocation9 + $0x1], 1 }

// kernel: gatnet_forward.5
= control target key start
LH: loop header
LB: loop body
LE: loop exit
PB: predicated region body
PF: predicated region fallthrough
CT: control target
= control target key end

     0   :  { %9 = vsyncpa [#allocation3], 0  ;;  %s1300_s0 = inlined_call_operand.hbm [shape: bf16[48,128], index: 0, kind: input, shape index: {}]   ;;  %s1301_s1 = inlined_call_operand.hbm [shape: bf16[128,48], index: 1, kind: input, shape index: {}]   ;;  %s1302_s2 = inlined_call_operand.hbm [shape: f32[48,128], index: 2, kind: input, shape index: {}]   ;;  %s1303_s3 = inlined_call_operand.hbm [shape: f32[1,48], index: 3, kind: input, shape index: {}]   ;;  %s1304_s4 = inlined_call_operand.hbm [shape: f32[48,128], index: 4, kind: output, shape index: {}]  }
   0x1   :  { %11 = vsyncpa [#allocation3 + $0x1], 0 }
   0x2   :  { %12 = vsyncpa [#allocation6], 0 }
   0x3   :  { %13 = vsyncpa [#allocation9], 0 }
   0x4   :  { %14 = vsyncpa [#allocation4], 0 }
   0x5   :  { %16 = vsyncpa [#allocation4 + $0x1], 0  ;;  %s1024_s15 = smov 0   ;;  %s1026_s16 = smov 0  }
   0x6   :  { %s1028_s17 = smov 0   ;;  %s1030_s18 = smov 0  }
   0x7 LB: > { %s1045_s19 = sadd.s32 4294967295, %s982_s18   ;;  %s608_s20 = sadd.s32 4294967294, %s982_s18   ;;  %s982_s18 = sphi %s1030_s18, %s1328_s18   ;;  %s978_s17 = sphi %s1028_s17, %s1327_s17   ;;  %s974_s16 = sphi %s1026_s16, %s1326_s16   ;;  %s970_s15 = sphi %s1024_s15, %s1325_s15  }
   0x8   : > { %p42_p0 = scmp.ne.s32.totalorder %s974_s16, %s970_s15  ;;  %p1305_p1 = scmp.eq.s32.totalorder %s1045_s19, 0 }
   0x9   : > { %p135_p3 = scmp.eq.s32.totalorder %s608_s20, 2  ;;  %p609_p5 = scmp.ge.s32.totalorder %s982_s18, 1 }
   0xa   : > { %p1054_p4 = por %p1305_p1, %p42_p0  ;;  %p142_p7 = scmp.lt.s32.totalorder %s982_s18, 4 }
   0xb   : > { %p1059_p6 = por %p135_p3, %p42_p0  ;;  %s984_s24 = smov [#allocation5]  }
   0xc   : > { %s1309_s21 = scalar_select %p1054_p4, 1, 0 }
   0xd   : > { %s1310_s22 = scalar_select %p1059_p6, 1, 0 }
   0xe   : > { %p1064_p8 = pnand %p609_p5, %p142_p7  ;;  %s154_s25 = sshll.u32 %s984_s24, 4  ;;  %s155_s25 = int_to_ptr.vmem [resolvable:$true] %s154_s25 }
   0xf   : > { %s985_s27 = smov [#allocation7]   ;;  %s794_s5 = scalar_lea.hbm %s1301_s1, 1024 }
  0x10   : > { %s1311_s23 = scalar_select %p1064_p8, 1, 0 }
  0x11   : > { %p701_p9 = pneg %p1064_p8  ;;  %s167_s28 = sshll.u32 %s985_s27, 4  ;;  %s1076_s28 = int_to_ptr.vmem [resolvable:$true] %s167_s28 }
  0x12   : > { %p795_p11 = scmp.ne.s32.totalorder %s1301_s1, %s794_s5  ;;  %p801_p3 = scmp.lt.u32.totalorder %s794_s5, %s1301_s1 }
  0x13   : > { %p1072_p10 = pnand %p701_p9, %p1305_p1 }
  0x15   : > { %p1086_p12 = pneg %p1072_p10 }
  0x17   : > { %p797_p13 = pnand %p1086_p12, %p795_p11 }
  0x19   : > { %p798_p0 = pneg %p797_p13 }
  0x1b   : > { %p803_p5 = pnand %p801_p3, %p798_p0 }
  0x1d   : > { %806 = shalt.err (!%p803_p5)
}
  0x1e   : > { %s807_s11 = scalar_lea.vmem %s155_s25, 1024  ;;  %p815_p2 = scmp.lt.s32.totalorder %s155_s25, %s155_s25 }
  0x1f   : > { %p808_p7 = scmp.ne.s32.totalorder %s155_s25, %s807_s11  ;;  %p816_p6 = scmp.lt.s32.totalorder %s807_s11, %s807_s11 }
  0x21   : > { %p810_p9 = pnand %p808_p7, %p1086_p12  ;;  %p817_p4 = por %p816_p6, %p815_p2 }
  0x23   : > { %p811_p1 = pneg %p810_p9 }
  0x25   : > { %p818_p8 = pnand %p817_p4, %p811_p1 }
  0x27   : > { %821 = shalt.err (!%p818_p8)
}
  0x28   : > { %s1308_s12 = smov 64   ;;  %s987_s13 = smov 4  }
  0x29   : > { %704 = dma.hbm_to_vmem [thread:$0]  (!%p1072_p10), %s1301_s1, 1024, %s155_s25, [#allocation6], %s1308_s12, %s1308_s12, %s987_s13  }
  0x2a   : > { %s822_s29 = scalar_lea.hbm %s1302_s2, 768 }
  0x2b   : > { %p823_p1 = scmp.ne.s32.totalorder %s1302_s2, %s822_s29  ;;  %p829_p6 = scmp.lt.u32.totalorder %s822_s29, %s1302_s2 }
  0x2d   : > { %p825_p2 = pnand %p823_p1, %p1086_p12 }
  0x2f   : > { %p826_p4 = pneg %p825_p2 }
  0x31   : > { %p831_p8 = pnand %p829_p6, %p826_p4 }
  0x33   : > { %834 = shalt.err (!%p831_p8)
}
  0x34   : > { %s835_s25 = scalar_lea.vmem %s1076_s28, 768  ;;  %p843_p3 = scmp.lt.s32.totalorder %s1076_s28, %s1076_s28 }
  0x35   : > { %p836_p11 = scmp.ne.s32.totalorder %s1076_s28, %s835_s25  ;;  %p844_p5 = scmp.lt.s32.totalorder %s835_s25, %s835_s25 }
  0x37   : > { %p838_p13 = pnand %p836_p11, %p1086_p12  ;;  %p845_p7 = por %p844_p5, %p843_p3 }
  0x39   : > { %p839_p0 = pneg %p838_p13 }
  0x3b   : > { %p846_p9 = pnand %p845_p7, %p839_p0 }
  0x3d   : > { %849 = shalt.err (!%p846_p9)
}
  0x3e   : > { %s988_s9 = smov 128   ;;  %s989_s10 = smov 8  }
  0x3f   : > { %707 = dma.hbm_to_vmem [thread:$0]  (!%p1072_p10), %s1302_s2, 768, %s1076_s28, [#allocation6], %s988_s9, %s988_s9, %s989_s10  }
  0x40   : > { %s990_s20 = smov [#allocation8]   ;;  %s1129_s27 = sadd.s32 1, %s982_s18  }
  0x41   : > { %s181_s24 = sshll.u32 %s990_s20, 4  ;;  %s850_s5 = scalar_lea.hbm %s1303_s3, 16  ;;  %s182_s24 = int_to_ptr.vmem [resolvable:$true] %s181_s24 }
  0x42   : > { %p851_p1 = scmp.ne.s32.totalorder %s1303_s3, %s850_s5  ;;  %p857_p6 = scmp.lt.u32.totalorder %s850_s5, %s1303_s3 }
  0x44   : > { %p853_p2 = pnand %p851_p1, %p1086_p12 }
  0x46   : > { %p854_p4 = pneg %p853_p2 }
  0x48   : > { %p859_p8 = pnand %p857_p6, %p854_p4 }
  0x4a   : > { %862 = shalt.err (!%p859_p8)
}
  0x4b   : > { %s863_s28 = scalar_lea.vmem %s182_s24, 16  ;;  %s870_s9 = scalar_lea.vmem %s182_s24, 32 }
  0x4c   : > { %p864_p11 = scmp.ne.s32.totalorder %s182_s24, %s863_s28  ;;  %p871_p3 = scmp.lt.s32.totalorder %s182_s24, %s182_s24 }
  0x4d   : > { %p872_p5 = scmp.lt.s32.totalorder %s870_s9, %s863_s28 }
  0x4e   : > { %p866_p13 = pnand %p864_p11, %p1086_p12 }
  0x4f   : > { %p873_p7 = por %p872_p5, %p871_p3 }
  0x50   : > { %p867_p0 = pneg %p866_p13 }
  0x52   : > { %p874_p9 = pnand %p873_p7, %p867_p0 }
  0x54   : > { %877 = shalt.err (!%p874_p9)
}
  0x55   : > { %710 = dma.hbm_to_vmem [thread:$0]  (!%p1072_p10), %s1303_s3, 16, %s182_s24, [#allocation9]  }
  0x56   : > { %s26_s8 = ssub.s32 %s982_s18, %s1129_s27  ;;  %s29_s12 = sadd.s32 1, %s978_s17 }
  0x57   : > { %p27_p12 = scmp.eq.s32.totalorder %s26_s8, 0  ;;  %p36_p1 = scmp.ne.s32.totalorder %s978_s17, %s974_s16 }
  0x58   : > { %p37_p2 = scmp.eq.s32.totalorder %s982_s18, 0  ;;  %p722_p4 = scmp.lt.s32.totalorder %s982_s18, 3 }
  0x59   : > { %s1157_s26 = scalar_select %p27_p12, %s978_s17, %s29_s12  }
  0x5a   : > { %p38_p6 = por %p37_p2, %p36_p1  ;;  %p1314_p8 = scmp.eq.s32.totalorder %s1045_s19, 2 }
  0x5b   : > { %s192_s20 = sand.u32 1, %s978_s17   ;;  %s640_s29 = sshll.u32 %s982_s18, 7 }
  0x5c   : > { %p1161_p11 = por %p1314_p8, %p36_p1  ;;  %s614_s30 = sshll.u32 %s192_s20, 3 }
  0x5d   : > { %s1170_s24 = scalar_lea.hbm %s1300_s0, %s640_s29  ;;  %s196_s7 = scalar_lea.vmem [#allocation2], %s614_s30 }
  0x5e   : > { %s203_s25 = sshll.u32 %s196_s7, 4  ;;  %p1172_p10 = pnand %p722_p4, %p38_p6  ;;  %s1176_s25 = int_to_ptr.vmem [resolvable:$true] %s203_s25 }
  0x5f   : > { %s1178_s9 = scalar_lea.sflag [#allocation3], %s192_s20  ;;  %s878_s10 = scalar_lea.hbm %s1170_s24, 128 }
  0x60   : > { %p879_p13 = scmp.ne.s32.totalorder %s1170_s24, %s878_s10  ;;  %p880_p0 = pneg %p1172_p10 }
  0x61   : > { %s883_s12 = scalar_lea.hbm %s1300_s0, 384  ;;  %p884_p7 = scmp.lt.u32.totalorder %s1170_s24, %s1300_s0 }
  0x62   : > { %p881_p3 = pnand %p880_p0, %p879_p13  ;;  %p885_p9 = scmp.lt.u32.totalorder %s883_s12, %s878_s10 }
  0x63   : > { %p887_p1 = scmp.lt.u32.totalorder %s878_s10, %s1170_s24 }
  0x64   : > { %p882_p5 = pneg %p881_p3  ;;  %p886_p12 = por %p885_p9, %p884_p7 }
  0x66   : > { %p888_p2 = por %p887_p1, %p886_p12 }
  0x68   : > { %p889_p4 = pnand %p888_p2, %p882_p5 }
  0x6a   : > { %892 = shalt.err (!%p889_p4)
}
  0x6b   : > { %s893_s20 = scalar_lea.vmem %s1176_s25, 128  ;;  %s991_s5 = smov [#allocation2]  }
  0x6c   : > { %p894_p6 = scmp.ne.s32.totalorder %s1176_s25, %s893_s20  ;;  %s898_s6 = sshll.u32 %s991_s5, 4  ;;  %s899_s6 = int_to_ptr.vmem [resolvable:$false] %s898_s6 }
  0x6d   : > { %s900_s7 = scalar_lea.vmem %s899_s6, 256  ;;  %p901_p3 = scmp.lt.s32.totalorder %s1176_s25, %s899_s6 }
  0x6e   : > { %p896_p8 = pnand %p894_p6, %p880_p0  ;;  %p902_p7 = scmp.lt.s32.totalorder %s900_s7, %s893_s20 }
  0x70   : > { %p897_p13 = pneg %p896_p8  ;;  %p903_p9 = por %p902_p7, %p901_p3 }
  0x72   : > { %p904_p12 = pnand %p903_p9, %p897_p13 }
  0x74   : > { %907 = shalt.err (!%p904_p12)
}
  0x75   : > { %s1317_s10 = smov 64   ;;  %p1318_p0 = scmp.ne.s32.totalorder %s1311_s23, 0 }
  0x76   : > { %714 = dma.hbm_to_vmem [thread:$0]  (!%p1172_p10), %s1170_s24, 128, %s1176_s25, %s1178_s9, %s1317_s10, %s1317_s10, %s987_s13  }
  0x77   : > { %215 = sbr.rel (%p1318_p0) target bundleno = 944 (0x3b0), region = 36  ;;  %s1212_s11 = sand.u32 (!%p1318_p0), 1, %s974_s16  }
  0x78   : > { %s618_s8 = sshll.u32 (!%p1318_p0), %s1212_s11, 3  ;;  %s218_s12 = scalar_lea.sflag (!%p1318_p0), [#allocation3], %s1212_s11 }
  0x79   : > { %s1216_s29 = scalar_lea.vmem (!%p1318_p0), [#allocation2], %s618_s8  ;;  %p1319_p5 = scmp.ne.s32.totalorder (!%p1318_p0), %s1309_s21, 0 }
  0x7e   : > { %953 = dma.done.wait (%p1319_p5), %s218_s12, 128  }
  0x7f   : > { %955 = vsyncadd (%p1319_p5), %s218_s12, 4294967168  ;;  %p1320_p10 = scmp.eq.s32.totalorder %s1045_s19, 0 }
  0x81   : > { %957 = dma.done.wait (%p1320_p10), [#allocation6], 1792   ;;  %p1321_p1 = pmov %p1320_p10 }
  0x83   : > { %959 = vsyncadd (%p1321_p1), [#allocation6], 4294965504  ;;  %p1322_p2 = pmov %p1321_p1 }
  0x84   : > { %p1323_p4 = pmov %p1321_p1 }
  0x85   : > { %961 = dma.done.wait (%p1322_p2), [#allocation9], 16  }
  0x86   : > { %963 = vsyncadd (%p1323_p4), [#allocation9], 4294967280  ;;  %v992_v0 = vmov 0.0   ;;  %vm993_vm0 = vmmov 0   ;;  %v994_v1 = vmov 16   ;;  %v773_v2 = vld [vmem:[#allocation5] sm:$0xff]  }
  0x87   : > { %655 = vmatprep.subr.bf16.mxu0 %v992_v0  ;;  %671 = vmatprep.mubr.msk.bf16.mxu0 %vm993_vm0, %v992_v0  ;;  %v774_v3 = vld [vmem:[#allocation5 + $0x8] sm:$0xff]   ;;  %s623_s21 = sshll.u32 %s1045_s19, 4  ;;  %v775_v4 = vld [vmem:[#allocation5 + $0x10] sm:$0xff]   ;;  %v776_v6 = vld [vmem:[#allocation5 + $0x18] sm:$0xff]   ;;  %v995_v22 = vmov -9e+15  }
  0x88   : > { %772 = vset.pattern.permute.xlu0 %v994_v1  ;;  %675 = vmatprep.subr.bf16.mxu1 %v992_v0  ;;  %s385_s23 = scalar_lea.vmem [#allocation7], %s623_s21  ;;  %v777_v8 = vld [vmem:[#allocation5 + $0x20] sm:$0xff]   ;;  %v778_v9 = vld [vmem:[#allocation5 + $0x28] sm:$0xff]   ;;  %v779_v10 = vld [vmem:[#allocation5 + $0x30] sm:$0xff]   ;;  %vm415_vm4 = vcmask 392192   ;;  %s622_s13 = sshll.u32 %s1212_s11, 4 }
  0x89   : > { %681 = vmatprep.mubr.msk.bf16.mxu1 %vm993_vm0, %v992_v0  ;;  %656 = vmatpush3.bf16.msra.mxu0 %v773_v2  ;;  %v386_v5 = vld [vmem:[%s385_s23] sm:$0xff]  ;;  %v387_v7 = vld [vmem:[%s385_s23 + $0x8] sm:$0xff]  ;;  %v379_v43 = vld [vmem:[#allocation7] sm:$0xff]  ;;  %s641_s24 = sshll.u32 %s1045_s19, 8  ;;  %s257_s25 = scalar_lea.vmem [#allocation10], %s622_s13 }
  0x8a   : > { %657 = vmatprep.subr.bf16.mxu0 %v992_v0  ;;  %391 = vperm.xlu0 %772, %v386_v5   ;;  %v780_v11 = vld [vmem:[#allocation5 + $0x38] sm:$0xff]   ;;  %v633_v14 = vld [vmem:[#allocation8] ss:$0 sm:$0xff]  ;;  %v380_v44 = vld [vmem:[#allocation7 + $0x8] sm:$0xff]  ;;  %s504_s28 = sshll.u32 %s257_s25, 4  ;;  %s1255_s20 = scalar_lea.hbm %s1304_s4, %s641_s24  ;;  %s1257_s28 = int_to_ptr.vmem [resolvable:$true] %s504_s28 }
  0x8b   : > { %v781_v12 = vld [vmem:[%s1216_s29] sm:$0xff]   ;;  %v439_v46 = vpack.c.bf16 %v380_v44, %v379_v43  ;;  %v383_v49 = vld [vmem:[#allocation7 + $0x20] sm:$0xff]  ;;  %v384_v50 = vld [vmem:[#allocation7 + $0x28] sm:$0xff]  ;;  %s491_s5 = scalar_lea.sflag [#allocation4], %s1212_s11  ;;  %s908_s6 = scalar_lea.vmem %s1257_s28, 256 }
  0x8c   : > { %v381_v45 = vld [vmem:[#allocation7 + $0x10] sm:$0xff]  ;;  %v382_v47 = vld [vmem:[#allocation7 + $0x18] sm:$0xff]  ;;  %v441_v51 = vpack.c.bf16 %v384_v50, %v383_v49  ;;  %p909_p6 = scmp.ne.s32.totalorder %s1257_s28, %s908_s6  ;;  %s996_s19 = smov [#allocation10]  }
  0x8d   : > { %658 = vmatpush3.bf16.msra.mxu0 %v774_v3  ;;  %676 = vmatpush3.bf16.msra.mxu1 %v439_v46  ;;  %v440_v48 = vpack.c.bf16 %v382_v47, %v381_v45  ;;  %s912_s7 = sshll.u32 %s996_s19, 4  ;;  %s913_s7 = int_to_ptr.vmem [resolvable:$false] %s912_s7 }
  0x8e   : > { %659 = vmatprep.subr.bf16.mxu0 %v992_v0  ;;  %396 = vperm.xlu0 %772, %v387_v7   ;;  %p910_p8 = pnand %p909_p6, %p1161_p11  ;;  %s914_s10 = scalar_lea.vmem %s913_s7, 512 }
  0x8f   : > { %677 = vmatprep.subr.bf16.mxu1 %v992_v0  ;;  %p915_p3 = scmp.lt.s32.totalorder %s1257_s28, %s913_s7  ;;  %p916_p7 = scmp.lt.s32.totalorder %s914_s10, %s908_s6 }
  0x90   : > { %p911_p13 = pneg %p910_p8 }
  0x91   : > { %660 = vmatpush3.bf16.msra.mxu0 %v775_v4  ;;  %678 = vmatpush3.bf16.msra.mxu1 %v440_v48  ;;  %p917_p9 = por %p916_p7, %p915_p3 }
  0x92   : > { %661 = vmatprep.subr.bf16.mxu0 %v992_v0  ;;  %679 = vmatprep.subr.bf16.mxu1 %v992_v0 }
  0x93   : > { %p918_p12 = pnand %p917_p9, %p911_p13 }
  0x95   : > { %662 = vmatpush3.bf16.msra.mxu0 %v776_v6  ;;  %680 = vmatpush3.bf16.msra.mxu1 %v441_v51 }
  0x96   : > { %663 = vmatprep.subr.bf16.mxu0 %v992_v0 }
  0x99   : > { %664 = vmatpush3.bf16.msra.mxu0 %v777_v8 }
  0x9a   : > { %665 = vmatprep.subr.bf16.mxu0 %v992_v0 }
  0x9d   : > { %666 = vmatpush3.bf16.msra.mxu0 %v778_v9 }
  0x9e   : > { %667 = vmatprep.subr.bf16.mxu0 %v992_v0 }
  0xa1   : > { %668 = vmatpush3.bf16.msra.mxu0 %v779_v10 }
  0xa2   : > { %669 = vmatprep.subr.bf16.mxu0 %v992_v0 }
  0xa5   : > { %670 = vmatpush3.bf16.msra.mxu0 %v780_v11 }
  0xa8   : > { %672 = vmatmul.mubr.bf16.vlgmr.msra.gmra.mrb[0].mxu0 %v781_v12 }
 0x109   : > { %v392_v13 = vpop.permute.xlu0 %391 }
 0x10a   : > { %v405_v16 = vadd.f32 %v633_v14, %v392_v13 }
 0x10c   : > { %v409_v18 = vmul.f32 0.2, %v405_v16  ;;  %vm407_vm1 = vcmp.gt.f32.partialorder %v405_v16, 0.0 }
 0x10d   : > { %v397_v15 = vpop.permute.xlu0 %396 }
 0x10e   : > { %v406_v17 = vadd.f32 %v633_v14, %v397_v15  ;;  %v411_v25 = vsel %vm407_vm1, %v405_v16, %v409_v18 }
 0x110   : > { %v410_v19 = vmul.f32 0.2, %v406_v17  ;;  %vm408_vm2 = vcmp.gt.f32.partialorder %v406_v17, 0.0 }
 0x112   : > { %v412_v29 = vsel %vm408_vm2, %v406_v17, %v410_v19 }
 0x17b   : > { %v368_v20 = vpop.f32.mrb[0].mxu0 }
 0x17c   : > { %vm375_vm3 = vcmp.ge.f32.partialorder %v368_v20, 0.8  ;;  %v673_v21 = vpop.f32.mrb[1].mxu0 }
 0x17d   : > { %v377_v23 = vsel %vm375_vm3, 0.0, %v995_v22  ;;  %v371_v24 = vpop.f32.mrb[2].mxu0 }
 0x17e   : > { %vm376_vm5 = vcmp.ge.f32.partialorder %v371_v24, 0.8  ;;  %v674_v26 = vpop.f32.mrb[3].mxu0  ;;  %v413_v27 = vadd.f32 %v411_v25, %v377_v23 }
 0x17f   : > { %v378_v28 = vsel %vm376_vm5, 0.0, %v995_v22 }
 0x180   : > { %v416_v30 = vsel %vm415_vm4, %v413_v27, -inf  ;;  %v414_v31 = vadd.f32 %v412_v29, %v378_v28 }
 0x181   : > { %417 = vmax.xlane.f32.xlu1 %v416_v30 }
 0x182   : > { %v419_v32 = vsel %vm415_vm4, %v414_v31, -inf }
 0x185   : > { %420 = vmax.xlane.f32.xlu1 %v419_v32 }
 0x20e   : > { %v418_v33 = vpop.xlane.xlu1 %417 }
 0x20f   : > { %v422_v34 = vsub.f32 %v413_v27, %v418_v33 }
 0x211   : > { %v424_v35 = vmul.f32 1.442695, %v422_v34 }
 0x212   : > { %v421_v36 = vpop.xlane.xlu1 %420 }
 0x213   : > { %782 = vpow2.f32 %v424_v35  ;;  %v423_v37 = vsub.f32 %v414_v31, %v421_v36 }
 0x215   : > { %v426_v38 = vmul.f32 1.442695, %v423_v37 }
 0x217   : > { %784 = vpow2.f32 %v426_v38 }
 0x21d   : > { %v783_v39 = vpop.eup %782 }
 0x21e   : > { %v428_v40 = vsel %vm415_vm4, %v783_v39, 0.0 }
 0x21f   : > { %429 = vadd.xlane.f32.xlu0 %v428_v40 }
 0x221   : > { %v785_v41 = vpop.eup %784 }
 0x222   : > { %v431_v42 = vsel %vm415_vm4, %v785_v41, 0.0 }
 0x223   : > { %432 = vadd.xlane.f32.xlu1 %v431_v42 }
 0x2ac   : > { %v430_v52 = vpop.xlane.xlu0 %429 }
 0x2ad   : > { %786 = vrcp.f32 %v430_v52 }
 0x2b0   : > { %v433_v53 = vpop.xlane.xlu1 %432 }
 0x2b1   : > { %788 = vrcp.f32 %v433_v53 }
 0x2b7   : > { %v787_v54 = vpop.eup %786 }
 0x2b8   : > { %v436_v56 = vmul.f32 %v787_v54, %v783_v39 }
 0x2bb   : > { %v789_v55 = vpop.eup %788 }
 0x2bc   : > { %v437_v57 = vmul.f32 %v789_v55, %v785_v41 }
 0x2be   : > { %v438_v58 = vpack.c.bf16 %v437_v57, %v436_v56 }
 0x2c0   : > { %682 = vmatmul.mubr.msk.bf16.vlgmr.msra.gmra.mrb[0].mxu1 %vm415_vm4, %v438_v58 }
 0x393   : > { %v479_v59 = vpop.f32.mrb[0].mxu1 }
 0x394   : > { %790 = vtanh.f32 %v479_v59  ;;  %v683_v60 = vpop.f32.mrb[1].mxu1 }
 0x395   : > { %v482_v61 = vpop.f32.mrb[2].mxu1 }
 0x396   : > { %792 = vtanh.f32 %v482_v61  ;;  %v684_v62 = vpop.f32.mrb[3].mxu1 }
 0x39e   : > { %v791_v63 = vpop.eup %790 }
 0x39f   : > { %488 = vst [vmem:[%s257_s25] sm:$0xff] %v791_v63 }
 0x3a0   : > { %v793_v0 = vpop.eup %792 }
 0x3a1   : > { %489 = vst [vmem:[%s257_s25 + $0x8] sm:$0xff] %v793_v0 }
 0x3a2   : > { %921 = shalt.err (!%p918_p12)
}
 0x3a3   : > { %s922_s8 = scalar_lea.hbm %s1255_s20, 256  ;;  %s926_s21 = scalar_lea.hbm %s1304_s4, 768 }
 0x3a4   : > { %p923_p0 = scmp.ne.s32.totalorder %s1255_s20, %s922_s8  ;;  %p927_p1 = scmp.lt.u32.totalorder %s1255_s20, %s1304_s4 }
 0x3a5   : > { %p928_p2 = scmp.lt.u32.totalorder %s926_s21, %s922_s8  ;;  %p930_p6 = scmp.lt.u32.totalorder %s922_s8, %s1255_s20 }
 0x3a6   : > { %p924_p5 = pnand %p923_p0, %p1161_p11 }
 0x3a7   : > { %p929_p4 = por %p928_p2, %p927_p1 }
 0x3a8   : > { %p925_p10 = pneg %p924_p5 }
 0x3a9   : > { %p931_p8 = por %p930_p6, %p929_p4 }
 0x3ab   : > { %p932_p13 = pnand %p931_p8, %p925_p10 }
 0x3ad   : > { %935 = shalt.err (!%p932_p13)
}
 0x3ae   : > { %s997_s24 = smov 128   ;;  %s998_s25 = smov 8  }
 0x3af   : > { %699 = dma.vmem_to_hbm [thread:$0]  (%p1161_p11), %s1257_s28, 256, %s1255_s20, %s491_s5, %s997_s24, %s997_s24, %s998_s25  }
 0x3b0 PF: > { %p726_p3 = scmp.ge.s32.totalorder %s982_s18, 2  ;;  %s519_s9 = sand.u32 1, %s970_s15  }
 0x3b1   : > { %p1324_p7 = scmp.ne.s32.totalorder %s1310_s22, 0  ;;  %s520_s30 = scalar_lea.sflag [#allocation4], %s519_s9 }
 0x3b3   : > { %p716_p9 = pnand %p726_p3, %p1324_p7 }
 0x3b5   : > { %965 = dma.done.wait (!%p716_p9), %s520_s30, 256  }
 0x3b6   : > { %967 = vsyncadd (!%p716_p9), %s520_s30, 4294967040  ;;  %p19_p12 = scmp.ge.s32.totalorder %s1129_s27, 5   ;;  %s1325_s15 = smov %s974_s16 }
 0x3b7   : > { %s1326_s16 = smov %s978_s17  ;;  %s1327_s17 = smov %s1157_s26 }
 0x3b8   : > { %s1328_s18 = smov %s1129_s27  ;;  %21 = sbr.rel (!%p19_p12) target bundleno = 7 (0x7), region = 94 }
 0x3bf   :  { %525 = vsyncpa [#allocation3], 1 }
 0x3c0   :  { %527 = vsyncpa [#allocation3 + $0x1], 1 }
 0x3c1   :  { %528 = vsyncpa [#allocation6], 1 }
 0x3c2   :  { %529 = vsyncpa [#allocation9], 1 }
 0x3c3   :  { %530 = vsyncpa [#allocation4], 1 }
 0x3c4   :  { %532 = vsyncpa [#allocation4 + $0x1], 1 }

// kernel: gatnet_forward.4
= control target key start
LH: loop header
LB: loop body
LE: loop exit
PB: predicated region body
PF: predicated region fallthrough
CT: control target
= control target key end

     0   :  { %10 = vsyncpa [#allocation3], 0  ;;  %s2351_s0 = inlined_call_operand.hbm [shape: bf16[48,128], index: 0, kind: input, shape index: {}]   ;;  %s2352_s1 = inlined_call_operand.hbm [shape: bf16[128,48], index: 1, kind: input, shape index: {}]   ;;  %s2353_s2 = inlined_call_operand.hbm [shape: bf16[48,256], index: 2, kind: input, shape index: {}]   ;;  %s2354_s3 = inlined_call_operand.hbm [shape: f32[4,48], index: 3, kind: input, shape index: {}]   ;;  %s2355_s4 = inlined_call_operand.hbm [shape: bf16[128,128], index: 4, kind: input, shape index: {}]   ;;  %s2356_s5 = inlined_call_operand.hbm [shape: f32[48,128], index: 5, kind: output, shape index: {}]  }
   0x1   :  { %12 = vsyncpa [#allocation3 + $0x1], 0 }
   0x2   :  { %13 = vsyncpa [#allocation6], 0 }
   0x3   :  { %14 = vsyncpa [#allocation9], 0 }
   0x4   :  { %15 = vsyncpa [#allocation4], 0 }
   0x5   :  { %17 = vsyncpa [#allocation4 + $0x1], 0  ;;  %s1951_s18 = smov 0   ;;  %s1953_s19 = smov 0  }
   0x6   :  { %s1955_s20 = smov 0   ;;  %s1957_s21 = smov 0  }
   0x7 LB: > { %s1972_s22 = sadd.s32 4294967295, %s1897_s21   ;;  %s1272_s23 = sadd.s32 4294967294, %s1897_s21   ;;  %s1897_s21 = sphi %s1957_s21, %s2381_s21   ;;  %s1893_s20 = sphi %s1955_s20, %s2380_s20   ;;  %s1889_s19 = sphi %s1953_s19, %s2379_s19   ;;  %s1885_s18 = sphi %s1951_s18, %s2378_s18  }
   0x8   : > { %p43_p0 = scmp.ne.s32.totalorder %s1889_s19, %s1885_s18  ;;  %p2357_p1 = scmp.eq.s32.totalorder %s1972_s22, 0 }
   0x9   : > { %p157_p3 = scmp.eq.s32.totalorder %s1272_s23, 2  ;;  %p1273_p5 = scmp.ge.s32.totalorder %s1897_s21, 1 }
   0xa   : > { %p1981_p4 = por %p2357_p1, %p43_p0  ;;  %p164_p7 = scmp.lt.s32.totalorder %s1897_s21, 4 }
   0xb   : > { %p1986_p6 = por %p157_p3, %p43_p0  ;;  %s1899_s27 = smov [#allocation5]  }
   0xc   : > { %s2362_s24 = scalar_select %p1981_p4, 1, 0 }
   0xd   : > { %s2363_s25 = scalar_select %p1986_p6, 1, 0 }
   0xe   : > { %p1991_p8 = pnand %p1273_p5, %p164_p7  ;;  %s176_s28 = sshll.u32 %s1899_s27, 4  ;;  %s1995_s28 = int_to_ptr.vmem [resolvable:$true] %s176_s28 }
   0xf   : > { %s1900_s30 = smov [#allocation8]   ;;  %s1901_s7 = smov [#allocation7]  }
  0x10   : > { %s2364_s26 = scalar_select %p1991_p8, 1, 0 }
  0x11   : > { %p1497_p9 = pneg %p1991_p8  ;;  %s203_s6 = sshll.u32 %s1900_s30, 4  ;;  %s2005_s6 = int_to_ptr.vmem [resolvable:$true] %s203_s6 }
  0x12   : > { %s2007_s8 = sshll.u32 %s1901_s7, 4  ;;  %s1681_s11 = scalar_lea.hbm %s2352_s1, 1024  ;;  %s190_s8 = int_to_ptr.vmem [resolvable:$true] %s2007_s8 }
  0x13   : > { %p2001_p10 = pnand %p1497_p9, %p2357_p1  ;;  %p1682_p11 = scmp.ne.s32.totalorder %s2352_s1, %s1681_s11 }
  0x14   : > { %p1688_p3 = scmp.lt.u32.totalorder %s1681_s11, %s2352_s1 }
  0x15   : > { %p2017_p12 = pneg %p2001_p10 }
  0x17   : > { %p1684_p13 = pnand %p2017_p12, %p1682_p11 }
  0x19   : > { %p1685_p0 = pneg %p1684_p13 }
  0x1b   : > { %p1690_p5 = pnand %p1688_p3, %p1685_p0 }
  0x1d   : > { %1693 = shalt.err (!%p1690_p5)
}
  0x1e   : > { %s1694_s17 = scalar_lea.vmem %s1995_s28, 1024  ;;  %p1702_p2 = scmp.lt.s32.totalorder %s1995_s28, %s1995_s28 }
  0x1f   : > { %p1695_p7 = scmp.ne.s32.totalorder %s1995_s28, %s1694_s17  ;;  %p1703_p6 = scmp.lt.s32.totalorder %s1694_s17, %s1694_s17 }
  0x21   : > { %p1697_p9 = pnand %p1695_p7, %p2017_p12  ;;  %p1704_p11 = por %p1703_p6, %p1702_p2 }
  0x23   : > { %p1698_p1 = pneg %p1697_p9 }
  0x25   : > { %p1705_p13 = pnand %p1704_p11, %p1698_p1 }
  0x27   : > { %1708 = shalt.err (!%p1705_p13)
}
  0x28   : > { %s2360_s23 = smov 64   ;;  %s1903_s27 = smov 4  }
  0x29   : > { %1500 = dma.hbm_to_vmem [thread:$0]  (!%p2001_p10), %s2352_s1, 1024, %s1995_s28, [#allocation6], %s2360_s23, %s2360_s23, %s1903_s27  }
  0x2a   : > { %s1709_s11 = scalar_lea.hbm %s2354_s3, 64 }
  0x2b   : > { %p1710_p1 = scmp.ne.s32.totalorder %s2354_s3, %s1709_s11  ;;  %p1716_p0 = scmp.lt.u32.totalorder %s1709_s11, %s2354_s3 }
  0x2d   : > { %p1712_p2 = pnand %p1710_p1, %p2017_p12 }
  0x2f   : > { %p1713_p6 = pneg %p1712_p2 }
  0x31   : > { %p1718_p3 = pnand %p1716_p0, %p1713_p6 }
  0x33   : > { %1721 = shalt.err (!%p1718_p3)
}
  0x34   : > { %s1722_s28 = scalar_lea.vmem %s2005_s6, 64  ;;  %p1730_p11 = scmp.lt.s32.totalorder %s2005_s6, %s2005_s6 }
  0x35   : > { %p1723_p5 = scmp.ne.s32.totalorder %s2005_s6, %s1722_s28  ;;  %p1731_p13 = scmp.lt.s32.totalorder %s1722_s28, %s1722_s28 }
  0x37   : > { %p1725_p7 = pnand %p1723_p5, %p2017_p12  ;;  %p1732_p1 = por %p1731_p13, %p1730_p11 }
  0x39   : > { %p1726_p9 = pneg %p1725_p7 }
  0x3b   : > { %p1733_p2 = pnand %p1732_p1, %p1726_p9 }
  0x3d   : > { %1736 = shalt.err (!%p1733_p2)
}
  0x3e   : > { %1506 = dma.hbm_to_vmem [thread:$0]  (!%p2001_p10), %s2354_s3, 64, %s2005_s6, [#allocation9]  }
  0x3f   : > { %s1737_s10 = scalar_lea.hbm %s2353_s2, 768 }
  0x40   : > { %p1738_p6 = scmp.ne.s32.totalorder %s2353_s2, %s1737_s10  ;;  %p1744_p5 = scmp.lt.u32.totalorder %s1737_s10, %s2353_s2 }
  0x42   : > { %p1740_p0 = pnand %p1738_p6, %p2017_p12 }
  0x44   : > { %p1741_p3 = pneg %p1740_p0 }
  0x46   : > { %p1746_p7 = pnand %p1744_p5, %p1741_p3 }
  0x48   : > { %1749 = shalt.err (!%p1746_p7)
}
  0x49   : > { %s1750_s16 = scalar_lea.vmem %s190_s8, 768  ;;  %p1758_p1 = scmp.lt.s32.totalorder %s190_s8, %s190_s8 }
  0x4a   : > { %p1751_p9 = scmp.ne.s32.totalorder %s190_s8, %s1750_s16  ;;  %p1759_p2 = scmp.lt.s32.totalorder %s1750_s16, %s1750_s16 }
  0x4c   : > { %p1753_p11 = pnand %p1751_p9, %p2017_p12  ;;  %p1760_p4 = por %p1759_p2, %p1758_p1 }
  0x4e   : > { %p1754_p13 = pneg %p1753_p11 }
  0x50   : > { %p1761_p8 = pnand %p1760_p4, %p1754_p13 }
  0x52   : > { %1764 = shalt.err (!%p1761_p8)
}
  0x53   : > { %s1904_s6 = smov 128   ;;  %s1905_s28 = smov 8  }
  0x54   : > { %1503 = dma.hbm_to_vmem [thread:$0]  (!%p2001_p10), %s2353_s2, 768, %s190_s8, [#allocation6], %s1904_s6, %s1904_s6, %s1905_s28  }
  0x55   : > { %s1906_s7 = smov [#allocation10]   ;;  %s1765_s12 = scalar_lea.hbm %s2355_s4, 1024 }
  0x56   : > { %s213_s9 = sshll.u32 %s1906_s7, 4  ;;  %p1766_p4 = scmp.ne.s32.totalorder %s2355_s4, %s1765_s12  ;;  %s214_s9 = int_to_ptr.vmem [resolvable:$true] %s213_s9 }
  0x57   : > { %p1772_p0 = scmp.lt.u32.totalorder %s1765_s12, %s2355_s4 }
  0x58   : > { %p1768_p8 = pnand %p1766_p4, %p2017_p12 }
  0x5a   : > { %p1769_p6 = pneg %p1768_p8 }
  0x5c   : > { %p1774_p3 = pnand %p1772_p0, %p1769_p6 }
  0x5e   : > { %1777 = shalt.err (!%p1774_p3)
}
  0x5f   : > { %s1778_s8 = scalar_lea.vmem %s214_s9, 1024  ;;  %p1786_p11 = scmp.lt.s32.totalorder %s214_s9, %s214_s9 }
  0x60   : > { %p1779_p5 = scmp.ne.s32.totalorder %s214_s9, %s1778_s8  ;;  %p1787_p13 = scmp.lt.s32.totalorder %s1778_s8, %s1778_s8 }
  0x62   : > { %p1781_p7 = pnand %p1779_p5, %p2017_p12  ;;  %p1788_p1 = por %p1787_p13, %p1786_p11 }
  0x64   : > { %p1782_p9 = pneg %p1781_p7 }
  0x66   : > { %p1789_p2 = pnand %p1788_p1, %p1782_p9 }
  0x68   : > { %1792 = shalt.err (!%p1789_p2)
}
  0x69   : > { %s2367_s6 = smov 64   ;;  %s2105_s14 = sadd.s32 1, %s1897_s21  }
  0x6a   : > { %1509 = dma.hbm_to_vmem [thread:$0]  (!%p2001_p10), %s2355_s4, 1024, %s214_s9, [#allocation9], %s2367_s6, %s2367_s6, %s1903_s27  }
  0x6b   : > { %s30_s29 = sadd.s32 1, %s1893_s20  ;;  %s27_s17 = ssub.s32 %s1897_s21, %s2105_s14 }
  0x6c   : > { %p37_p12 = scmp.ne.s32.totalorder %s1893_s20, %s1889_s19  ;;  %p28_p4 = scmp.eq.s32.totalorder %s27_s17, 0 }
  0x6d   : > { %p38_p8 = scmp.eq.s32.totalorder %s1897_s21, 0  ;;  %p2368_p6 = scmp.eq.s32.totalorder %s1972_s22, 2 }
  0x6e   : > { %p1522_p3 = scmp.lt.s32.totalorder %s1897_s21, 3  ;;  %s227_s10 = sand.u32 1, %s1893_s20  }
  0x6f   : > { %p2115_p0 = por %p2368_p6, %p37_p12  ;;  %p39_p5 = por %p38_p8, %p37_p12 }
  0x70   : > { %s2121_s7 = scalar_select %p28_p4, %s1893_s20, %s30_s29  }
  0x71   : > { %s1279_s11 = sshll.u32 %s227_s10, 3  ;;  %s1333_s9 = sshll.u32 %s1897_s21, 7 }
  0x72   : > { %s2128_s15 = scalar_lea.hbm %s2351_s0, %s1333_s9  ;;  %s231_s16 = scalar_lea.vmem [#allocation2], %s1279_s11 }
  0x73   : > { %s238_s8 = sshll.u32 %s231_s16, 4  ;;  %p2132_p10 = pnand %p1522_p3, %p39_p5  ;;  %s2130_s8 = int_to_ptr.vmem [resolvable:$true] %s238_s8 }
  0x74   : > { %s2136_s28 = scalar_lea.sflag [#allocation3], %s227_s10  ;;  %s1793_s29 = scalar_lea.hbm %s2128_s15, 128 }
  0x75   : > { %p1794_p7 = scmp.ne.s32.totalorder %s2128_s15, %s1793_s29  ;;  %p1795_p9 = pneg %p2132_p10 }
  0x76   : > { %s1798_s9 = scalar_lea.hbm %s2351_s0, 384  ;;  %p1799_p1 = scmp.lt.u32.totalorder %s2128_s15, %s2351_s0 }
  0x77   : > { %p1796_p11 = pnand %p1795_p9, %p1794_p7  ;;  %p1800_p2 = scmp.lt.u32.totalorder %s1798_s9, %s1793_s29 }
  0x78   : > { %p1802_p4 = scmp.lt.u32.totalorder %s1793_s29, %s2128_s15 }
  0x79   : > { %p1797_p13 = pneg %p1796_p11  ;;  %p1801_p12 = por %p1800_p2, %p1799_p1 }
  0x7b   : > { %p1803_p8 = por %p1802_p4, %p1801_p12 }
  0x7d   : > { %p1804_p6 = pnand %p1803_p8, %p1797_p13 }
  0x7f   : > { %1807 = shalt.err (!%p1804_p6)
}
  0x80   : > { %s1808_s10 = scalar_lea.vmem %s2130_s8, 128  ;;  %s1907_s16 = smov [#allocation2]  }
  0x81   : > { %p1809_p3 = scmp.ne.s32.totalorder %s2130_s8, %s1808_s10  ;;  %s1813_s17 = sshll.u32 %s1907_s16, 4  ;;  %s1814_s17 = int_to_ptr.vmem [resolvable:$false] %s1813_s17 }
  0x82   : > { %s1815_s11 = scalar_lea.vmem %s1814_s17, 256  ;;  %p1816_p11 = scmp.lt.s32.totalorder %s2130_s8, %s1814_s17 }
  0x83   : > { %p1811_p5 = pnand %p1809_p3, %p1795_p9  ;;  %p1817_p1 = scmp.lt.s32.totalorder %s1815_s11, %s1808_s10 }
  0x85   : > { %p1812_p7 = pneg %p1811_p5  ;;  %p1818_p2 = por %p1817_p1, %p1816_p11 }
  0x87   : > { %p1819_p12 = pnand %p1818_p2, %p1812_p7 }
  0x89   : > { %1822 = shalt.err (!%p1819_p12)
}
  0x8a   : > { %1513 = dma.hbm_to_vmem [thread:$0]  (!%p2132_p10), %s2128_s15, 128, %s2130_s8, %s2136_s28, %s2367_s6, %s2367_s6, %s1903_s27  }
  0x8b   : > { %p2371_p9 = scmp.ne.s32.totalorder %s2364_s26, 0 }
  0x8c   : > { %s2170_s29 = sand.u32 (!%p2371_p9), 1, %s1889_s19   ;;  %p2372_p13 = scmp.ne.s32.totalorder (!%p2371_p9), %s2362_s24, 0 }
  0x8d   : > { %250 = sbr.rel (%p2371_p9) target bundleno = 1292 (0x50c), region = 40  ;;  %s1283_s9 = sshll.u32 (!%p2371_p9), %s2170_s29, 3 }
  0x8e   : > { %s253_s12 = scalar_lea.sflag (!%p2371_p9), [#allocation3], %s2170_s29  ;;  %s2174_s13 = scalar_lea.vmem (!%p2371_p9), [#allocation2], %s1283_s9 }
  0x94   : > { %1868 = dma.done.wait (%p2372_p13), %s253_s12, 128  }
  0x95   : > { %1870 = vsyncadd (%p2372_p13), %s253_s12, 4294967168  ;;  %p2373_p10 = scmp.eq.s32.totalorder %s1972_s22, 0 }
  0x97   : > { %1872 = dma.done.wait (%p2373_p10), [#allocation6], 1792   ;;  %p2374_p4 = pmov %p2373_p10 }
  0x99   : > { %1874 = vsyncadd (%p2374_p4), [#allocation6], 4294965504  ;;  %p2375_p8 = pmov %p2374_p4 }
  0x9a   : > { %p2376_p6 = pmov %p2374_p4 }
  0x9b   : > { %1876 = dma.done.wait (%p2375_p8), [#allocation9], 1088  }
  0x9c   : > { %1878 = vsyncadd (%p2376_p6), [#allocation9], 4294966208  ;;  %v1908_v0 = vmov 0.0   ;;  %vm1909_vm0 = vmmov 0   ;;  %v1910_v1 = vmov 2   ;;  %v1911_v2 = vmov 0  }
  0x9d   : > { %1373 = vmatprep.subr.bf16.mxu0 %v1908_v0  ;;  %1389 = vmatprep.mubr.msk.bf16.mxu0 %vm1909_vm0, %v1908_v0  ;;  %v1605_v3 = vld [vmem:[#allocation5] sm:$0xff]   ;;  %v1606_v4 = vld [vmem:[#allocation5 + $0x8] sm:$0xff]   ;;  %s1289_s24 = sshll.u32 %s1972_s22, 4  ;;  %v1607_v5 = vld [vmem:[#allocation5 + $0x10] sm:$0xff]   ;;  %v1912_v16 = vmov 3   ;;  %v1913_v17 = vmov 1   ;;  %v452_v24 = vlaneseq }
  0x9e   : > { %1592 = vset.pattern.permute.xlu1 %v1910_v1  ;;  %1580 = vset.pattern.permute.xlu0 %v1911_v2  ;;  %v1608_v6 = vld [vmem:[#allocation5 + $0x18] sm:$0xff]   ;;  %s430_s26 = scalar_lea.vmem [#allocation7], %s1289_s24  ;;  %v1609_v11 = vld [vmem:[#allocation5 + $0x20] sm:$0xff]   ;;  %v1610_v15 = vld [vmem:[#allocation5 + $0x28] sm:$0xff]   ;;  %vm466_vm5 = vcmask 392192   ;;  %s1915_s27 = smov 96  }
  0x9f   : > { %1393 = vmatprep.subr.bf16.mxu1 %v1908_v0  ;;  %1399 = vmatprep.mubr.msk.bf16.mxu1 %vm1909_vm0, %v1908_v0  ;;  %v431_v7 = vld [vmem:[%s430_s26] sm:$0xff]  ;;  %v432_v8 = vld [vmem:[%s430_s26 + $0x8] sm:$0xff]  ;;  %v2206_v21 = vld [vmem:[#allocation7] ss:$8 sps:$4 sm:$0xff]   ;;  %v453_v26 = vshrl.u32 %v452_v24, 7  ;;  %s1916_s6 = smov 64  }
  0xa0   : > { %1374 = vmatpush3.bf16.msra.mxu0 %v1605_v3  ;;  %v435_v9 = vrot.slane %v431_v7, 4  ;;  %v436_v10 = vrot.slane %v432_v8, 4  ;;  %v1611_v18 = vld [vmem:[#allocation5 + $0x30] sm:$0xff]   ;;  %v1612_v19 = vld [vmem:[#allocation5 + $0x38] sm:$0xff]   ;;  %1394 = vmatpush3.bf16.msra.mxu1 %v2206_v21  ;;  %v2214_v23 = vld [vmem:[#allocation7 + $0x20] ss:$8 sps:$4 sm:$0xff]  }
  0xa1   : > { %1375 = vmatprep.subr.bf16.mxu0 %v1908_v0  ;;  %v1613_v20 = vld [vmem:[%s2174_s13] sm:$0xff]   ;;  %1395 = vmatprep.subr.bf16.mxu1 %v1908_v0  ;;  %v579_v27 = vsub.s32 1, %v453_v26  ;;  %v807_v29 = vsub.s32 2, %v453_v26  ;;  %v454_v30 = vsub.s32 0, %v453_v26  ;;  %v980_v39 = vsub.s32 3, %v453_v26  ;;  %s1917_s15 = smov 32  }
  0xa2   : > { %v439_v12 = vunpack.c.l.bf16 %v435_v9  ;;  %v440_v13 = vunpack.c.l.bf16 %v436_v10  ;;  %v2210_v22 = vld [vmem:[#allocation7 + $0x10] ss:$8 sps:$4 sm:$0xff]   ;;  %v1914_v50 = vmov -9e+15   ;;  %s1288_s8 = sshll.u32 %s2170_s29, 4  ;;  %s1335_s10 = sshll.u32 %s1972_s22, 8 }
  0xa3   : > { %v441_v31 = vld [vmem:[#allocation8] sm:$0xf]  ;;  %s298_s23 = scalar_lea.vmem [#allocation11], %s1288_s8  ;;  %s2308_s11 = scalar_lea.hbm %s2356_s5, %s1335_s10 }
  0xa4   : > { %1376 = vmatpush3.bf16.msra.mxu0 %v1606_v4  ;;  %v1593_v14 = vpack.i.bf16 %v440_v13, %v439_v12  ;;  %1396 = vmatpush3.bf16.msra.mxu1 %v2210_v22  ;;  %v580_v32 = vrot.slane %v441_v31, %v579_v27  ;;  %v808_v34 = vrot.slane %v441_v31, %v807_v29  ;;  %s1159_s28 = sshll.u32 %s298_s23, 4  ;;  %s1146_s9 = scalar_lea.sflag [#allocation4], %s2170_s29  ;;  %s2303_s28 = int_to_ptr.vmem [resolvable:$true] %s1159_s28 }
  0xa5   : > { %1377 = vmatprep.subr.bf16.mxu0 %v1908_v0  ;;  %1397 = vmatprep.subr.bf16.mxu1 %v1908_v0  ;;  %v455_v35 = vrot.slane %v441_v31, %v454_v30  ;;  %v981_v42 = vrot.slane %v441_v31, %v980_v39  ;;  %s1823_s12 = scalar_lea.vmem %s2303_s28, 256  ;;  %s1918_s22 = smov [#allocation11]  }
  0xa6   : > { %1594 = vperm.xlu1 %1592, %v1593_v14   ;;  %1582 = vperm.xlu0 %1580, %v1593_v14   ;;  %p1824_p3 = scmp.ne.s32.totalorder %s2303_s28, %s1823_s12  ;;  %s1827_s13 = sshll.u32 %s1918_s22, 4  ;;  %s1828_s13 = int_to_ptr.vmem [resolvable:$false] %s1827_s13 }
  0xa7   : > { %s1829_s24 = scalar_lea.vmem %s1828_s13, 512  ;;  %p1830_p11 = scmp.lt.s32.totalorder %s2303_s28, %s1828_s13 }
  0xa8   : > { %1378 = vmatpush3.bf16.msra.mxu0 %v1607_v5  ;;  %1398 = vmatpush3.bf16.msra.mxu1 %v2214_v23  ;;  %p1825_p5 = pnand %p1824_p3, %p2115_p0  ;;  %p1831_p1 = scmp.lt.s32.totalorder %s1829_s24, %s1823_s12 }
  0xa9   : > { %1379 = vmatprep.subr.bf16.mxu0 %v1908_v0  ;;  %1403 = vmatprep.subr.bf16.mxu1 %v1908_v0 }
  0xaa   : > { %1598 = vset.pattern.permute.xlu1 %v1912_v16  ;;  %1586 = vset.pattern.permute.xlu0 %v1913_v17  ;;  %p1826_p7 = pneg %p1825_p5  ;;  %p1832_p2 = por %p1831_p1, %p1830_p11 }
  0xab   : > { %1600 = vperm.xlu1 %1598, %v1593_v14   ;;  %1588 = vperm.xlu0 %1586, %v1593_v14  }
  0xac   : > { %1380 = vmatpush3.bf16.msra.mxu0 %v1608_v6  ;;  %p1833_p12 = pnand %p1832_p2, %p1826_p7 }
  0xad   : > { %1381 = vmatprep.subr.bf16.mxu0 %v1908_v0 }
  0xaf   : > { %1604 = vset.pattern.permute.xlu0 %v1912_v16 }
  0xb0   : > { %1382 = vmatpush3.bf16.msra.mxu0 %v1609_v11 }
  0xb1   : > { %1383 = vmatprep.subr.bf16.mxu0 %v1908_v0 }
  0xb4   : > { %1384 = vmatpush3.bf16.msra.mxu0 %v1610_v15 }
  0xb5   : > { %1385 = vmatprep.subr.bf16.mxu0 %v1908_v0 }
  0xb8   : > { %1386 = vmatpush3.bf16.msra.mxu0 %v1611_v18 }
  0xb9   : > { %1387 = vmatprep.subr.bf16.mxu0 %v1908_v0 }
  0xbc   : > { %1388 = vmatpush3.bf16.msra.mxu0 %v1612_v19 }
  0xbd   : > { %1429 = vmatprep.subr.bf16.mxu0 %v1908_v0 }
  0xbf   : > { %1390 = vmatmul.mubr.bf16.vlgmr.msra.gmra.mrb[0].mxu0 %v1613_v20 }
  0xc0   : > { %1435 = vmatprep.mubr.msk.bf16.mxu0 %vm1909_vm0, %v1908_v0 }
 0x125   : > { %v1583_v25 = vpop.permute.xlu0 %1582  ;;  %v1595_v33 = vpop.permute.xlu1 %1594 }
 0x126   : > { %v1674_v37 = vadd.low.f32.bf16 %v808_v34, %v1595_v33  ;;  %v1675_v38 = vadd.low.f32.bf16 %v455_v35, %v1583_v25  ;;  %v1676_v45 = vadd.high.f32.bf16 %v455_v35, %v1583_v25  ;;  %v1679_v9 = vadd.high.f32.bf16 %v808_v34, %v1595_v33 }
 0x128   : > { %v460_v43 = vmul.f32 0.2, %v1675_v38  ;;  %v813_v44 = vmul.f32 0.2, %v1674_v37  ;;  %vm458_vm2 = vcmp.gt.f32.partialorder %v1675_v38, 0.0  ;;  %vm811_vm3 = vcmp.gt.f32.partialorder %v1674_v37, 0.0 }
 0x129   : > { %v461_v58 = vmul.f32 0.2, %v1676_v45  ;;  %vm459_vm7 = vcmp.gt.f32.partialorder %v1676_v45, 0.0  ;;  %v814_v13 = vmul.f32 0.2, %v1679_v9  ;;  %vm812_vm10 = vcmp.gt.f32.partialorder %v1679_v9, 0.0 }
 0x12a   : > { %v1589_v28 = vpop.permute.xlu0 %1588  ;;  %v1601_v40 = vpop.permute.xlu1 %1600  ;;  %v462_v53 = vsel %vm458_vm2, %v1675_v38, %v460_v43  ;;  %v815_v54 = vsel %vm811_vm3, %v1674_v37, %v813_v44 }
 0x12b   : > { %v1673_v36 = vadd.low.f32.bf16 %v580_v32, %v1589_v28  ;;  %v1677_v49 = vadd.low.f32.bf16 %v981_v42, %v1601_v40  ;;  %v463_v1 = vsel %vm459_vm7, %v1676_v45, %v461_v58  ;;  %v1678_v8 = vadd.high.f32.bf16 %v580_v32, %v1589_v28 }
 0x12c   : > { %v1680_v11 = vadd.high.f32.bf16 %v981_v42, %v1601_v40  ;;  %v816_v15 = vsel %vm812_vm10, %v1679_v9, %v814_v13 }
 0x12d   : > { %v585_v41 = vmul.f32 0.2, %v1673_v36  ;;  %vm583_vm1 = vcmp.gt.f32.partialorder %v1673_v36, 0.0  ;;  %v986_v63 = vmul.f32 0.2, %v1677_v49  ;;  %vm984_vm8 = vcmp.gt.f32.partialorder %v1677_v49, 0.0 }
 0x12e   : > { %v586_v10 = vmul.f32 0.2, %v1678_v8  ;;  %vm584_vm9 = vcmp.gt.f32.partialorder %v1678_v8, 0.0  ;;  %v987_v16 = vmul.f32 0.2, %v1680_v11  ;;  %vm985_vm11 = vcmp.gt.f32.partialorder %v1680_v11, 0.0 }
 0x12f   : > { %v587_v47 = vsel %vm583_vm1, %v1673_v36, %v585_v41  ;;  %v988_v4 = vsel %vm984_vm8, %v1677_v49, %v986_v63  ;;  %vm696_vm1 = vcmask 261120  }
 0x130   : > { %v588_v12 = vsel %vm584_vm9, %v1678_v8, %v586_v10  ;;  %v989_v19 = vsel %vm985_vm11, %v1680_v11, %v987_v16 }
 0x192   : > { %v409_v46 = vpop.f32.mrb[0].mxu0 }
 0x193   : > { %vm416_vm4 = vcmp.ge.f32.partialorder %v409_v46, 0.8  ;;  %v1391_v48 = vpop.f32.mrb[1].mxu0 }
 0x194   : > { %v418_v51 = vsel %vm416_vm4, 0.0, %v1914_v50  ;;  %v412_v52 = vpop.f32.mrb[2].mxu0 }
 0x195   : > { %vm417_vm6 = vcmp.ge.f32.partialorder %v412_v52, 0.8  ;;  %v1392_v55 = vpop.f32.mrb[3].mxu0  ;;  %v589_v56 = vadd.f32 %v587_v47, %v418_v51  ;;  %v464_v57 = vadd.f32 %v462_v53, %v418_v51  ;;  %v817_v61 = vadd.f32 %v815_v54, %v418_v51 }
 0x196   : > { %v419_v62 = vsel %vm417_vm6, 0.0, %v1914_v50  ;;  %v990_v6 = vadd.f32 %v988_v4, %v418_v51 }
 0x197   : > { %v591_v59 = vsel %vm466_vm5, %v589_v56, -inf  ;;  %v467_v60 = vsel %vm466_vm5, %v464_v57, -inf  ;;  %v819_v2 = vsel %vm466_vm5, %v817_v61, -inf  ;;  %v465_v3 = vadd.f32 %v463_v1, %v419_v62 }
 0x198   : > { %592 = vmax.xlane.f32.xlu0 %v591_v59  ;;  %468 = vmax.xlane.f32.xlu1 %v467_v60  ;;  %v992_v7 = vsel %vm466_vm5, %v990_v6, -inf  ;;  %v590_v14 = vadd.f32 %v588_v12, %v419_v62  ;;  %v818_v18 = vadd.f32 %v816_v15, %v419_v62  ;;  %v2228_v24 = vadd.f32 %v989_v19, %v419_v62 }
 0x199   : > { %v470_v5 = vsel %vm466_vm5, %v465_v3, -inf }
 0x19a   : > { %v594_v17 = vsel %vm466_vm5, %v590_v14, -inf  ;;  %v822_v20 = vsel %vm466_vm5, %v818_v18, -inf  ;;  %v995_v25 = vsel %vm466_vm5, %v2228_v24, -inf }
 0x19c   : > { %820 = vmax.xlane.f32.xlu0 %v819_v2 }
 0x1a0   : > { %471 = vmax.xlane.f32.xlu0 %v470_v5 }
 0x1a4   : > { %993 = vmax.xlane.f32.xlu0 %v992_v7 }
 0x1a9   : > { %616 = vrot.lane.b32.xlu1 %v2210_v22, %s1915_s27 }
 0x1ba   : > { %614 = vrot.lane.b32.xlu0 %v2206_v21, %s1915_s27 }
 0x1be   : > { %618 = vrot.lane.b32.xlu0 %v2214_v23, %s1915_s27 }
 0x1cd   : > { %595 = vmax.xlane.f32.xlu1 %v594_v17 }
 0x1d1   : > { %823 = vmax.xlane.f32.xlu1 %v822_v20 }
 0x1d5   : > { %996 = vmax.xlane.f32.xlu1 %v995_v25 }
 0x1e6   : > { %842 = vrot.lane.b32.xlu1 %v2206_v21, %s1916_s6 }
 0x225   : > { %v593_v26 = vpop.xlane.xlu0 %592  ;;  %v469_v27 = vpop.xlane.xlu1 %468 }
 0x226   : > { %v597_v28 = vsub.f32 %v589_v56, %v593_v26  ;;  %v473_v29 = vsub.f32 %v464_v57, %v469_v27 }
 0x228   : > { %v475_v30 = vmul.f32 1.442695, %v473_v29  ;;  %v599_v31 = vmul.f32 1.442695, %v597_v28 }
 0x229   : > { %v821_v32 = vpop.xlane.xlu0 %820  ;;  %v617_v51 = vpop.permute.xlu1 %616 }
 0x22a   : > { %v825_v33 = vsub.f32 %v817_v61, %v821_v32  ;;  %1625 = vpow2.f32 %v475_v30 }
 0x22b   : > { %1627 = vpow2.f32 %v599_v31 }
 0x22c   : > { %v827_v34 = vmul.f32 1.442695, %v825_v33 }
 0x22d   : > { %v472_v35 = vpop.xlane.xlu0 %471 }
 0x22e   : > { %1629 = vpow2.f32 %v827_v34  ;;  %v474_v36 = vsub.f32 %v465_v3, %v472_v35 }
 0x230   : > { %v477_v39 = vmul.f32 1.442695, %v474_v36 }
 0x231   : > { %v994_v37 = vpop.xlane.xlu0 %993 }
 0x232   : > { %v998_v38 = vsub.f32 %v990_v6, %v994_v37 }
 0x234   : > { %v1000_v40 = vmul.f32 1.442695, %v998_v38  ;;  %v1626_v41 = vpop.eup %1625 }
 0x235   : > { %v479_v42 = vsel %vm466_vm5, %v1626_v41, 0.0  ;;  %v2235_v43 = vpop.eup %1627  ;;  %v615_v5 = vpop.permute.xlu0 %614 }
 0x236   : > { %1631 = vpow2.f32 %v1000_v40  ;;  %480 = vadd.xlane.f32.xlu0 %v479_v42  ;;  %v603_v46 = vsel %vm466_vm5, %v2235_v43, 0.0  ;;  %v1617_v40 = vld [vmem:[#allocation10 + $0x10] sm:$0xff]  }
 0x237   : > { %1633 = vpow2.f32 %v477_v39 }
 0x238   : > { %v2237_v44 = vpop.eup %1629 }
 0x239   : > { %v831_v45 = vsel %vm466_vm5, %v2237_v44, 0.0  ;;  %v619_v6 = vpop.permute.xlu0 %618 }
 0x23a   : > { %832 = vadd.xlane.f32.xlu1 %v831_v45  ;;  %604 = vadd.xlane.f32.xlu0 %v603_v46 }
 0x240   : > { %v2243_v47 = vpop.eup %1631 }
 0x241   : > { %v1004_v48 = vsel %vm466_vm5, %v2243_v47, 0.0  ;;  %v1634_v49 = vpop.eup %1633 }
 0x242   : > { %1005 = vadd.xlane.f32.xlu1 %v1004_v48  ;;  %v482_v50 = vsel %vm466_vm5, %v1634_v49, 0.0 }
 0x246   : > { %483 = vadd.xlane.f32.xlu1 %v482_v50 }
 0x250   : > { %844 = vrot.lane.b32.xlu0 %v2210_v22, %s1916_s6 }
 0x25a   : > { %v596_v52 = vpop.xlane.xlu1 %595 }
 0x25b   : > { %v598_v53 = vsub.f32 %v590_v14, %v596_v52 }
 0x25d   : > { %v601_v54 = vmul.f32 1.442695, %v598_v53 }
 0x25e   : > { %v824_v55 = vpop.xlane.xlu1 %823 }
 0x25f   : > { %1635 = vpow2.f32 %v601_v54  ;;  %v826_v56 = vsub.f32 %v818_v18, %v824_v55 }
 0x261   : > { %v829_v57 = vmul.f32 1.442695, %v826_v56 }
 0x262   : > { %v997_v58 = vpop.xlane.xlu1 %996 }
 0x263   : > { %1637 = vpow2.f32 %v829_v57  ;;  %v999_v1 = vsub.f32 %v2228_v24, %v997_v58 }
 0x265   : > { %v1002_v2 = vmul.f32 1.442695, %v999_v1 }
 0x266   : > { %v843_v59 = vpop.permute.xlu1 %842 }
 0x267   : > { %1430 = vmatpush3.bf16.msra.mxu0 %v843_v59  ;;  %1639 = vpow2.f32 %v1002_v2 }
 0x268   : > { %1431 = vmatprep.subr.bf16.mxu0 %v1908_v0 }
 0x269   : > { %v1636_v60 = vpop.eup %1635 }
 0x26a   : > { %v606_v61 = vsel %vm466_vm5, %v1636_v60, 0.0 }
 0x26b   : > { %607 = vadd.xlane.f32.xlu1 %v606_v61 }
 0x26d   : > { %v1638_v62 = vpop.eup %1637 }
 0x26e   : > { %v834_v63 = vsel %vm466_vm5, %v1638_v62, 0.0 }
 0x26f   : > { %835 = vadd.xlane.f32.xlu0 %v834_v63 }
 0x271   : > { %v2258_v3 = vpop.eup %1639 }
 0x272   : > { %v1007_v4 = vsel %vm466_vm5, %v2258_v3, 0.0 }
 0x27c   : > { %1015 = vrot.lane.b32.xlu1 %v2206_v21, %s1917_s15 }
 0x285   : > { %846 = vrot.lane.b32.xlu0 %v2214_v23, %s1916_s6 }
 0x289   : > { %1017 = vrot.lane.b32.xlu0 %v2210_v22, %s1917_s15 }
 0x2a0   : > { %1008 = vadd.xlane.f32.xlu1 %v1007_v4 }
 0x2b1   : > { %1019 = vrot.lane.b32.xlu1 %v2214_v23, %s1917_s15 }
 0x2c3   : > { %v481_v21 = vpop.xlane.xlu0 %480 }
 0x2c4   : > { %1641 = vrcp.f32 %v481_v21 }
 0x2c7   : > { %v605_v7 = vpop.xlane.xlu0 %604  ;;  %v833_v8 = vpop.xlane.xlu1 %832 }
 0x2cb   : > { %v845_v9 = vpop.permute.xlu0 %844 }
 0x2cc   : > { %1432 = vmatpush3.bf16.msra.mxu0 %v845_v9 }
 0x2cd   : > { %1433 = vmatprep.subr.bf16.mxu0 %v1908_v0 }
 0x2ce   : > { %v1642_v11 = vpop.eup %1641 }
 0x2cf   : > { %v1006_v22 = vpop.xlane.xlu1 %1005  ;;  %v487_v13 = vmul.f32 %v1642_v11, %v1626_v41  ;;  %v1618_v41 = vld [vmem:[#allocation10 + $0x18] sm:$0xff]  }
 0x2d3   : > { %v484_v10 = vpop.xlane.xlu1 %483 }
 0x2d4   : > { %1643 = vrcp.f32 %v484_v10 }
 0x2d5   : > { %1645 = vrcp.f32 %v605_v7 }
 0x2de   : > { %v1644_v12 = vpop.eup %1643 }
 0x2df   : > { %v488_v14 = vmul.f32 %v1644_v12, %v1634_v49  ;;  %v1646_v17 = vpop.eup %1645 }
 0x2e0   : > { %v611_v20 = vmul.f32 %v1646_v17, %v2235_v43 }
 0x2e1   : > { %v489_v15 = vpack.c.bf16 %v488_v14, %v487_v13 }
 0x2e3   : > { %1400 = vmatmul.mubr.msk.bf16.vlgmr.msra.gmra.mrb[0].mxu1 %vm466_vm5, %v489_v15  ;;  %v1619_v15 = vld [vmem:[#allocation10] sm:$0xff]  }
 0x2e4   : > { %1404 = vmatpush3.bf16.msra.mxu1 %v615_v5  ;;  %1409 = vmatprep.mubr.msk.bf16.mxu1 %vm1909_vm0, %v1908_v0 }
 0x2e5   : > { %1405 = vmatprep.subr.bf16.mxu1 %v1908_v0 }
 0x2e8   : > { %1406 = vmatpush3.bf16.msra.mxu1 %v617_v51 }
 0x2e9   : > { %1407 = vmatprep.subr.bf16.mxu1 %v1908_v0 }
 0x2ec   : > { %1408 = vmatpush3.bf16.msra.mxu1 %v619_v6 }
 0x2ed   : > { %1413 = vmatprep.subr.bf16.mxu1 %v1908_v0 }
 0x2f8   : > { %v608_v23 = vpop.xlane.xlu1 %607 }
 0x2f9   : > { %1647 = vrcp.f32 %v608_v23 }
 0x2fa   : > { %1649 = vrcp.f32 %v833_v8 }
 0x2fc   : > { %v836_v16 = vpop.xlane.xlu0 %835  ;;  %v1016_v31 = vpop.permute.xlu1 %1015 }
 0x2fd   : > { %1651 = vrcp.f32 %v836_v16 }
 0x2fe   : > { %1653 = vrcp.f32 %v1006_v22 }
 0x300   : > { %v847_v18 = vpop.permute.xlu0 %846 }
 0x301   : > { %1434 = vmatpush3.bf16.msra.mxu0 %v847_v18 }
 0x302   : > { %1447 = vmatprep.subr.bf16.mxu0 %v1908_v0 }
 0x303   : > { %v1648_v19 = vpop.eup %1647 }
 0x304   : > { %v612_v24 = vmul.f32 %v1648_v19, %v1636_v60  ;;  %v1650_v25 = vpop.eup %1649  ;;  %v1018_v32 = vpop.permute.xlu0 %1017  ;;  %v1620_v19 = vld [vmem:[#allocation10 + $0x8] sm:$0xff]  }
 0x305   : > { %v839_v28 = vmul.f32 %v1650_v25, %v2237_v44 }
 0x306   : > { %v613_v26 = vpack.c.bf16 %v612_v24, %v611_v20 }
 0x307   : > { %v1652_v27 = vpop.eup %1651 }
 0x308   : > { %1410 = vmatmul.mubr.msk.bf16.vlgmr.msra.gmra.mrb[4].mxu1 %vm466_vm5, %v613_v26  ;;  %v840_v29 = vmul.f32 %v1652_v27, %v1638_v62  ;;  %v1654_v35 = vpop.eup %1653  ;;  %v1621_v26 = vld [vmem:[#allocation10 + $0x20] sm:$0xff]   ;;  %v1622_v27 = vld [vmem:[#allocation10 + $0x28] sm:$0xff]  }
 0x309   : > { %1417 = vmatprep.mubr.msk.bf16.mxu1 %vm1909_vm0, %v1908_v0  ;;  %v1012_v37 = vmul.f32 %v1654_v35, %v2243_v47  ;;  %1414 = vmatpush3.bf16.msra.mxu1 %v1617_v40 }
 0x30a   : > { %v841_v30 = vpack.c.bf16 %v840_v29, %v839_v28  ;;  %1415 = vmatprep.subr.bf16.mxu1 %v1908_v0  ;;  %v1623_v28 = vld [vmem:[#allocation10 + $0x30] sm:$0xff]   ;;  %v1624_v29 = vld [vmem:[#allocation10 + $0x38] sm:$0xff]  }
 0x30c   : > { %1436 = vmatmul.mubr.msk.bf16.vlgmr.msra.gmra.mrb[4].mxu0 %vm466_vm5, %v841_v30 }
 0x30d   : > { %1448 = vmatpush3.bf16.msra.mxu0 %v1016_v31  ;;  %1453 = vmatprep.mubr.msk.bf16.mxu0 %vm1909_vm0, %v1908_v0 }
 0x30e   : > { %1449 = vmatprep.subr.bf16.mxu0 %v1908_v0  ;;  %1416 = vmatpush3.bf16.msra.mxu1 %v1618_v41 }
 0x30f   : > { %1421 = vmatprep.subr.bf16.mxu1 %v1908_v0 }
 0x311   : > { %1450 = vmatpush3.bf16.msra.mxu0 %v1018_v32 }
 0x312   : > { %1451 = vmatprep.subr.bf16.mxu0 %v1908_v0 }
 0x32d   : > { %v1009_v33 = vpop.xlane.xlu1 %1008 }
 0x32e   : > { %1655 = vrcp.f32 %v1009_v33 }
 0x331   : > { %v1020_v34 = vpop.permute.xlu1 %1019 }
 0x332   : > { %1452 = vmatpush3.bf16.msra.mxu0 %v1020_v34 }
 0x338   : > { %v1656_v36 = vpop.eup %1655 }
 0x339   : > { %v1013_v38 = vmul.f32 %v1656_v36, %v2258_v3 }
 0x33b   : > { %v1014_v39 = vpack.c.bf16 %v1013_v38, %v1012_v37 }
 0x33d   : > { %1454 = vmatmul.mubr.msk.bf16.vlgmr.msra.gmra.mrb[8].mxu0 %vm466_vm5, %v1014_v39 }
 0x3b6   : > { %v545_v42 = vpop.f32.mrb[0].mxu1 }
 0x3b7   : > { %v554_v43 = vmin.f32 %v545_v42, 0.0  ;;  %v1401_v44 = vpop.f32.mrb[1].mxu1  ;;  %vm552_vm12 = vcmp.gt.f32.partialorder %v545_v42, 0.0 }
 0x3b8   : > { %v548_v45 = vpop.f32.mrb[2].mxu1 }
 0x3b9   : > { %v556_v46 = vmul.f32 1.442695, %v554_v43  ;;  %v555_v48 = vmin.f32 %v548_v45, 0.0  ;;  %v1402_v47 = vpop.f32.mrb[3].mxu1  ;;  %vm553_vm13 = vcmp.gt.f32.partialorder %v548_v45, 0.0 }
 0x3bb   : > { %1657 = vpow2.f32 %v556_v46  ;;  %v558_v49 = vmul.f32 1.442695, %v555_v48 }
 0x3bd   : > { %1659 = vpow2.f32 %v558_v49 }
 0x3c5   : > { %v1658_v50 = vpop.eup %1657 }
 0x3c6   : > { %v1305_v51 = vadd.f32 -1.0, %v1658_v50 }
 0x3c7   : > { %v1660_v52 = vpop.eup %1659 }
 0x3c8   : > { %v1306_v53 = vadd.f32 -1.0, %v1660_v52  ;;  %v562_v54 = vsel %vm552_vm12, %v545_v42, %v1305_v51 }
 0x3ca   : > { %v563_v55 = vsel %vm553_vm13, %v548_v45, %v1306_v53 }
 0x3cb   : > { %v564_v56 = vpack.c.bf16 %v563_v55, %v562_v54 }
 0x3db   : > { %v660_v57 = vpop.f32.mrb[4].mxu1 }
 0x3dc   : > { %v669_v58 = vmin.f32 %v660_v57, 0.0  ;;  %v1411_v59 = vpop.f32.mrb[5].mxu1  ;;  %vm667_vm14 = vcmp.gt.f32.partialorder %v660_v57, 0.0 }
 0x3dd   : > { %v663_v60 = vpop.f32.mrb[6].mxu1 }
 0x3de   : > { %v671_v61 = vmul.f32 1.442695, %v669_v58  ;;  %v670_v62 = vmin.f32 %v663_v60, 0.0  ;;  %v1412_v63 = vpop.f32.mrb[7].mxu1  ;;  %vm668_vm15 = vcmp.gt.f32.partialorder %v663_v60, 0.0 }
 0x3df   : > { %v888_v2 = vpop.f32.mrb[4].mxu0 }
 0x3e0   : > { %1661 = vpow2.f32 %v671_v61  ;;  %v673_v1 = vmul.f32 1.442695, %v670_v62  ;;  %v897_v3 = vmin.f32 %v888_v2, 0.0  ;;  %v1437_v4 = vpop.f32.mrb[5].mxu0  ;;  %vm895_vm2 = vcmp.gt.f32.partialorder %v888_v2, 0.0 }
 0x3e1   : > { %v891_v5 = vpop.f32.mrb[6].mxu0 }
 0x3e2   : > { %1663 = vpow2.f32 %v673_v1  ;;  %v899_v6 = vmul.f32 1.442695, %v897_v3  ;;  %v898_v21 = vmin.f32 %v891_v5, 0.0  ;;  %v1438_v7 = vpop.f32.mrb[7].mxu0  ;;  %vm896_vm3 = vcmp.gt.f32.partialorder %v891_v5, 0.0 }
 0x3e4   : > { %1665 = vpow2.f32 %v899_v6  ;;  %v901_v8 = vmul.f32 1.442695, %v898_v21 }
 0x3e6   : > { %1667 = vpow2.f32 %v901_v8 }
 0x3ea   : > { %v1662_v9 = vpop.eup %1661 }
 0x3eb   : > { %v1308_v22 = vadd.f32 -1.0, %v1662_v9 }
 0x3ec   : > { %v1664_v10 = vpop.eup %1663 }
 0x3ed   : > { %v1309_v11 = vadd.f32 -1.0, %v1664_v10  ;;  %v677_v13 = vsel %vm667_vm14, %v660_v57, %v1308_v22 }
 0x3ee   : > { %v1666_v12 = vpop.eup %1665 }
 0x3ef   : > { %v678_v14 = vsel %vm668_vm15, %v663_v60, %v1309_v11  ;;  %v1317_v16 = vadd.f32 -1.0, %v1666_v12 }
 0x3f0   : > { %v679_v23 = vpack.c.bf16 %v678_v14, %v677_v13  ;;  %v1668_v17 = vpop.eup %1667 }
 0x3f1   : > { %v1318_v18 = vadd.f32 -1.0, %v1668_v17  ;;  %v905_v20 = vsel %vm895_vm2, %v888_v2, %v1317_v16 }
 0x3f2   : > { %1418 = vmatmul.mubr.msk.bf16.vlgmr.msra.gmra.mrb[8].mxu1 %vm696_vm1, %v679_v23 }
 0x3f3   : > { %1422 = vmatpush3.bf16.msra.mxu1 %v1619_v15  ;;  %1425 = vmatprep.mubr.msk.bf16.mxu1 %vm1909_vm0, %v1908_v0  ;;  %v906_v24 = vsel %vm896_vm3, %v891_v5, %v1318_v18 }
 0x3f4   : > { %1423 = vmatprep.subr.bf16.mxu1 %v1908_v0  ;;  %v907_v25 = vpack.c.bf16 %v906_v24, %v905_v20 }
 0x3f7   : > { %1424 = vmatpush3.bf16.msra.mxu1 %v1620_v19 }
 0x3f8   : > { %1439 = vmatprep.subr.bf16.mxu1 %v1908_v0 }
 0x3fe   : > { %1426 = vmatmul.mubr.msk.bf16.vlgmr.msra.gmra.mrb[8].mxu1 %vm696_vm1, %v564_v56 }
 0x3ff   : > { %1440 = vmatpush3.bf16.msra.mxu1 %v1621_v26  ;;  %1443 = vmatprep.mubr.msk.bf16.mxu1 %vm1909_vm0, %v1908_v0 }
 0x400   : > { %1441 = vmatprep.subr.bf16.mxu1 %v1908_v0 }
 0x403   : > { %1442 = vmatpush3.bf16.msra.mxu1 %v1622_v27 }
 0x404   : > { %1457 = vmatprep.subr.bf16.mxu1 %v1908_v0 }
 0x40a   : > { %1444 = vmatmul.mubr.msk.bf16.vlgmr.msra.gmra.mrb[8].mxu1 %vm696_vm1, %v907_v25 }
 0x40b   : > { %1458 = vmatpush3.bf16.msra.mxu1 %v1623_v28  ;;  %1461 = vmatprep.mubr.msk.bf16.mxu1 %vm1909_vm0, %v1908_v0 }
 0x40c   : > { %1459 = vmatprep.subr.bf16.mxu1 %v1908_v0 }
 0x40f   : > { %1460 = vmatpush3.bf16.msra.mxu1 %v1624_v29 }
 0x410   : > { %v1061_v30 = vpop.f32.mrb[8].mxu0 }
 0x411   : > { %v1070_v31 = vmin.f32 %v1061_v30, 0.0  ;;  %v1455_v32 = vpop.f32.mrb[9].mxu0  ;;  %vm1068_vm0 = vcmp.gt.f32.partialorder %v1061_v30, 0.0 }
 0x412   : > { %v1064_v33 = vpop.f32.mrb[10].mxu0 }
 0x413   : > { %v1072_v34 = vmul.f32 1.442695, %v1070_v31  ;;  %v1071_v35 = vmin.f32 %v1064_v33, 0.0  ;;  %v1456_v36 = vpop.f32.mrb[11].mxu0  ;;  %vm1069_vm4 = vcmp.gt.f32.partialorder %v1064_v33, 0.0 }
 0x415   : > { %1669 = vpow2.f32 %v1072_v34  ;;  %v1074_v37 = vmul.f32 1.442695, %v1071_v35 }
 0x417   : > { %1671 = vpow2.f32 %v1074_v37 }
 0x41f   : > { %v1670_v38 = vpop.eup %1669 }
 0x420   : > { %v1323_v39 = vadd.f32 -1.0, %v1670_v38 }
 0x421   : > { %v1672_v40 = vpop.eup %1671 }
 0x422   : > { %v1324_v41 = vadd.f32 -1.0, %v1672_v40  ;;  %v1078_v0 = vsel %vm1068_vm0, %v1061_v30, %v1323_v39 }
 0x424   : > { %v1079_v42 = vsel %vm1069_vm4, %v1064_v33, %v1324_v41 }
 0x425   : > { %v1080_v43 = vpack.c.bf16 %v1079_v42, %v1078_v0 }
 0x427   : > { %1462 = vmatmul.mubr.msk.bf16.vlgmr.msra.gmra.mrb[8].mxu1 %vm696_vm1, %v1080_v43 }
 0x4fa   : > { %v1134_v44 = vpop.f32.mrb[8].mxu1 }
 0x4fb   : > { %1143 = vst [vmem:[%s298_s23] sm:$0xff] %v1134_v44  ;;  %v1463_v45 = vpop.f32.mrb[9].mxu1 }
 0x4fc   : > { %v1137_v46 = vpop.f32.mrb[10].mxu1 }
 0x4fd   : > { %1144 = vst [vmem:[%s298_s23 + $0x8] sm:$0xff] %v1137_v46  ;;  %v1464_v48 = vpop.f32.mrb[11].mxu1 }
 0x4fe   : > { %1836 = shalt.err (!%p1833_p12)
}
 0x4ff   : > { %s1837_s26 = scalar_lea.hbm %s2308_s11, 256  ;;  %s1841_s15 = scalar_lea.hbm %s2356_s5, 768 }
 0x500   : > { %p1838_p9 = scmp.ne.s32.totalorder %s2308_s11, %s1837_s26  ;;  %p1842_p4 = scmp.lt.u32.totalorder %s2308_s11, %s2356_s5 }
 0x501   : > { %p1843_p8 = scmp.lt.u32.totalorder %s1841_s15, %s1837_s26  ;;  %p1845_p3 = scmp.lt.u32.totalorder %s1837_s26, %s2308_s11 }
 0x502   : > { %p1839_p13 = pnand %p1838_p9, %p2115_p0 }
 0x503   : > { %p1844_p6 = por %p1843_p8, %p1842_p4 }
 0x504   : > { %p1840_p10 = pneg %p1839_p13 }
 0x505   : > { %p1846_p5 = por %p1845_p3, %p1844_p6 }
 0x507   : > { %p1847_p7 = pnand %p1846_p5, %p1840_p10 }
 0x509   : > { %1850 = shalt.err (!%p1847_p7)
}
 0x50a   : > { %s1919_s10 = smov 128   ;;  %s1920_s16 = smov 8  }
 0x50b   : > { %1495 = dma.vmem_to_hbm [thread:$0]  (%p2115_p0), %s2303_s28, 256, %s2308_s11, %s1146_s9, %s1919_s10, %s1919_s10, %s1920_s16  }
 0x50c PF: > { %p1527_p11 = scmp.ge.s32.totalorder %s1897_s21, 2  ;;  %s1174_s17 = sand.u32 1, %s1885_s18  }
 0x50d   : > { %p2377_p1 = scmp.ne.s32.totalorder %s2363_s25, 0  ;;  %s1175_s12 = scalar_lea.sflag [#allocation4], %s1174_s17 }
 0x50f   : > { %p1515_p2 = pnand %p1527_p11, %p2377_p1 }
 0x511   : > { %1880 = dma.done.wait (!%p1515_p2), %s1175_s12, 256  }
 0x512   : > { %1882 = vsyncadd (!%p1515_p2), %s1175_s12, 4294967040  ;;  %p20_p12 = scmp.ge.s32.totalorder %s2105_s14, 5   ;;  %s2378_s18 = smov %s1889_s19 }
 0x513   : > { %s2379_s19 = smov %s1893_s20  ;;  %s2380_s20 = smov %s2121_s7 }
 0x514   : > { %s2381_s21 = smov %s2105_s14  ;;  %22 = sbr.rel (!%p20_p12) target bundleno = 7 (0x7), region = 102 }
 0x51b   :  { %1180 = vsyncpa [#allocation3], 1 }
 0x51c   :  { %1182 = vsyncpa [#allocation3 + $0x1], 1 }
 0x51d   :  { %1183 = vsyncpa [#allocation6], 1 }
 0x51e   :  { %1184 = vsyncpa [#allocation9], 1 }
 0x51f   :  { %1185 = vsyncpa [#allocation4], 1 }
 0x520   :  { %1187 = vsyncpa [#allocation4 + $0x1], 1 }

</bundles_post_ra>
